<compile_context>
chip_gen: v7x
topology: tpu7x:2x2x1
jax: 0.10.0
libtpu: 0.0.40
codegen_flags: <defaults>
</compile_context>

<pallas_src>
import functools

import jax
import jax.numpy as jnp
from jax.experimental import pallas as pl
from jax.experimental.pallas import tpu as pltpu

EPS = 1e-5


def _layernorm(x, gamma, beta):
    mu = jnp.mean(x, axis=-1, keepdims=True)
    var = jnp.mean((x - mu) ** 2, axis=-1, keepdims=True)
    return (x - mu) * jax.lax.rsqrt(var + EPS) * gamma + beta


def transformer_layer_kernel(num_heads, compute_dtype,
                             xq_ref, xkv_ref,
                             g1_ref, b1_ref,
                             wq_ref, wkv_ref, wp_ref, bp_ref,
                             g2_ref, b2_ref,
                             w1_ref, bb1_ref, w2_ref, bb2_ref,
                             o_ref):
    xq = xq_ref[0]                      # (TQ, C)  query rows for this grid step
    xkv = xkv_ref[0]                    # (N,  C)  full sequence (keys / values)
    tq, c = xq.shape
    m = xkv.shape[0]
    hd = c // num_heads
    scale = hd ** -0.5
    cdt = compute_dtype

    g1 = g1_ref[...]
    b1 = b1_ref[...]

    # ---- attention branch: xq + project(attn(norm1(x))) ----
    hq = _layernorm(xq, g1, b1)                   # f32
    hk = _layernorm(xkv, g1, b1)                  # f32

    q = jnp.dot(hq.astype(cdt), wq_ref[...],
                preferred_element_type=jnp.float32)            # (TQ, C)
    kv = jnp.dot(hk.astype(cdt), wkv_ref[...],
                 preferred_element_type=jnp.float32)           # (N, 2C)
    k = kv[:, :c]
    v = kv[:, c:]

    # Head-batched layout (H, seq, hd): one batched matmul pair instead of a
    # Python per-head loop with lane-slice relayouts + concat.
    qh = jnp.swapaxes(q.reshape(tq, num_heads, hd), 0, 1).astype(cdt)  # (H, TQ, hd)
    kh = jnp.swapaxes(k.reshape(m, num_heads, hd), 0, 1).astype(cdt)   # (H, M, hd)
    vh = jnp.swapaxes(v.reshape(m, num_heads, hd), 0, 1).astype(cdt)   # (H, M, hd)

    scores = jnp.einsum("hqd,hkd->hqk", qh, kh,
                        preferred_element_type=jnp.float32) * scale    # (H, TQ, M)
    scores = scores - jnp.max(scores, axis=-1, keepdims=True)
    p = jnp.exp(scores)
    p = p * pl.reciprocal(jnp.sum(p, axis=-1, keepdims=True), approx=True)

    out_h = jnp.einsum("hqk,hkd->hqd", p.astype(cdt), vh,
                       preferred_element_type=jnp.float32)             # (H, TQ, hd)
    attn = jnp.swapaxes(out_h, 0, 1).reshape(tq, c)                    # (TQ, C)
    attn = jnp.dot(attn.astype(cdt), wp_ref[...],
                   preferred_element_type=jnp.float32) + bp_ref[...]

    x1 = xq + attn

    # ---- MLP branch: x1 + fc2(relu(fc1(norm2(x1)))) ----
    h2 = _layernorm(x1, g2_ref[...], b2_ref[...])
    mlp = jnp.dot(h2.astype(cdt), w1_ref[...],
                  preferred_element_type=jnp.float32) + bb1_ref[...]
    mlp = jnp.maximum(mlp, 0.0)
    mlp = jnp.dot(mlp.astype(cdt), w2_ref[...],
                  preferred_element_type=jnp.float32) + bb2_ref[...]

    o_ref[0] = (x1 + mlp).astype(o_ref.dtype)


def transformer_layer(x, params, num_heads, *, tq=None,
                      compute_dtype=jnp.bfloat16):
    B, N, C = x.shape
    H = params["w1"].shape[1]

    if tq is None:
        tq = 128 if (N > 128 and N % 128 == 0) else N
    assert N % tq == 0, "sequence length must be divisible by the query tile"
    n_q = N // tq
    # NOTE: for best store throughput C should be a multiple of 128 (lane-dense
    # output blocks); unaligned C still works since blocks equal full dims.
    # TODO(synk): key-tile (flash-style online-softmax) accumulation for very
    # long sequences; current version bounds queries per step but keeps full-N keys.

    # Cast the matmul weights once (halves VMEM residency + HBM->VMEM DMA);
    # LN params / biases stay f32 and are applied after f32 accumulation.
    wq = params["wq"].astype(compute_dtype)
    wkv = params["wkv"].astype(compute_dtype)
    wp = params["wp"].astype(compute_dtype)
    w1 = params["w1"].astype(compute_dtype)
    w2 = params["w2"].astype(compute_dtype)
    small = (params["g1"], params["b1"], params["bp"], params["g2"],
             params["b2"], params["bb1"], params["bb2"])

    def nbytes(a):
        return int(a.size) * a.dtype.itemsize

    # Rough double-buffered residency estimate + headroom; clamp to
    # [32 MiB, 64 MiB] (64 MiB = smallest physical VMEM across gens, v7x).
    resident = (sum(nbytes(a) for a in (wq, wkv, wp, w1, w2)) +
                sum(nbytes(a) for a in small) +
                (tq * C + N * C + tq * C) * x.dtype.itemsize)
    vmem_limit = int(min(max(2 * resident + (16 << 20), 32 << 20), 64 << 20))

    def rep(shape):
        return pl.BlockSpec(shape, lambda b, qi: (0,) * len(shape))

    kern = functools.partial(transformer_layer_kernel, num_heads, compute_dtype)

    return pl.pallas_call(
        kern,
        out_shape=jax.ShapeDtypeStruct((B, N, C), x.dtype),
        grid=(B, n_q),
        in_specs=[
            pl.BlockSpec((1, tq, C), lambda b, qi: (b, qi, 0)),   # query rows
            pl.BlockSpec((1, N, C), lambda b, qi: (b, 0, 0)),     # full seq (K/V)
            rep((1, C)), rep((1, C)),                             # norm1 gamma/beta
            rep((C, C)), rep((C, 2 * C)),                         # Wq, Wkv (no bias)
            rep((C, C)), rep((1, C)),                             # Wproj, bproj
            rep((1, C)), rep((1, C)),                             # norm2 gamma/beta
            rep((C, H)), rep((1, H)),                             # fc1
            rep((H, C)), rep((1, C)),                             # fc2
        ],
        out_specs=pl.BlockSpec((1, tq, C), lambda b, qi: (b, qi, 0)),
        compiler_params=pltpu.CompilerParams(
            dimension_semantics=("parallel", "parallel"),
            vmem_limit_bytes=vmem_limit,
        ),
    )(x, x, params["g1"], params["b1"], wq, wkv, wp, params["bp"],
      params["g2"], params["b2"], w1, params["bb1"], w2, params["bb2"])


def ref_forward(x, p, num_heads):
    """Pure-JAX f32 reference matching the PyTorch forward."""
    def ln(z, g, b):
        mu = z.mean(-1, keepdims=True)
        var = ((z - mu) ** 2).mean(-1, keepdims=True)
        return (z - mu) / jnp.sqrt(var + EPS) * g + b

    B, N, C = x.shape
    hd = C // num_heads
    h = ln(x, p["g1"], p["b1"])
    q = h @ p["wq"]
    kv = h @ p["wkv"]
    k, v = kv[..., :C], kv[..., C:]
    qh = q.reshape(B, N, num_heads, hd)
    kh = k.reshape(B, N, num_heads, hd)
    vh = v.reshape(B, N, num_heads, hd)
    att = jnp.einsum("bnhd,bmhd->bnmh", qh, kh) * (hd ** -0.5)
    att = jax.nn.softmax(att, axis=2)
    out = jnp.einsum("bnmh,bmhd->bnhd", att, vh).reshape(B, N, C)
    out = out @ p["wp"] + p["bp"]
    x1 = x + out
    h2 = ln(x1, p["g2"], p["b2"])
    m = jnp.maximum(h2 @ p["w1"] + p["bb1"], 0.0)
    m = m @ p["w2"] + p["bb2"]
    return x1 + m


if __name__ == "__main__":
    # Small, lane-aligned config: batch=2, seq=8, dim_self=dim_ref=128, heads=4,
    # mlp_ratio=4 -> hidden=512.  (C multiple of 128 keeps stores lane-dense.)
    B, N, C, NH = 2, 8, 128, 4
    H = int(C * 4.0)

    key = jax.random.PRNGKey(0)
    ks = jax.random.split(key, 10)
    s = 0.05
    params = {
        # LayerNorms initialized like nn.LayerNorm (gamma=1, beta=0)
        "g1": jnp.ones((1, C), jnp.float32),
        "b1": jnp.zeros((1, C), jnp.float32),
        "g2": jnp.ones((1, C), jnp.float32),
        "b2": jnp.zeros((1, C), jnp.float32),
        # Linear weights stored as (in, out); biases as (1, out)
        "wq": s * jax.random.normal(ks[0], (C, C), jnp.float32),
        "wkv": s * jax.random.normal(ks[1], (C, 2 * C), jnp.float32),
        "wp": s * jax.random.normal(ks[2], (C, C), jnp.float32),
        "bp": s * jax.random.normal(ks[3], (1, C), jnp.float32),
        "w1": s * jax.random.normal(ks[4], (C, H), jnp.float32),
        "bb1": s * jax.random.normal(ks[5], (1, H), jnp.float32),
        "w2": s * jax.random.normal(ks[6], (H, C), jnp.float32),
        "bb2": s * jax.random.normal(ks[7], (1, C), jnp.float32),
    }
    x = jax.random.normal(ks[8], (B, N, C), jnp.float32)

    out = transformer_layer(x, params, NH)
    out = jax.block_until_ready(out)

    ref = ref_forward(x, params, NH)
    assert out.shape == (B, N, C)
    # bf16 MXU operands + approx reciprocal => looser tolerance than f32.
    err = float(jnp.max(jnp.abs(out - ref)))
    assert err < 3e-2, f"mismatch vs reference: max abs err {err}"

    print("KERNEL_OK")
</pallas_src>

<mosaic_0001>
module attributes {stable_mosaic.version = 11 : i64} {
  func.func @transformer_layer_kernel(%arg0: i32, %arg1: i32, %arg2: memref<1x8x128xf32, #tpu.memory_space<vmem>>, %arg3: memref<1x8x128xf32, #tpu.memory_space<vmem>>, %arg4: memref<1x128xf32, #tpu.memory_space<vmem>>, %arg5: memref<1x128xf32, #tpu.memory_space<vmem>>, %arg6: memref<128x128xbf16, #tpu.memory_space<vmem>>, %arg7: memref<128x256xbf16, #tpu.memory_space<vmem>>, %arg8: memref<128x128xbf16, #tpu.memory_space<vmem>>, %arg9: memref<1x128xf32, #tpu.memory_space<vmem>>, %arg10: memref<1x128xf32, #tpu.memory_space<vmem>>, %arg11: memref<1x128xf32, #tpu.memory_space<vmem>>, %arg12: memref<128x512xbf16, #tpu.memory_space<vmem>>, %arg13: memref<1x512xf32, #tpu.memory_space<vmem>>, %arg14: memref<512x128xbf16, #tpu.memory_space<vmem>>, %arg15: memref<1x128xf32, #tpu.memory_space<vmem>>, %arg16: memref<1x8x128xf32, #tpu.memory_space<vmem>>) attributes {dimension_semantics = [#tpu.dimension_semantics<parallel>, #tpu.dimension_semantics<parallel>], iteration_bounds = array<i64: 2, 1>, scalar_prefetch = 0 : i64, scratch_operands = 0 : i64, tpu.core_type = #tpu.core_type<tc>, window_params = [{transform_indices = @transform_0, window_bounds = array<i64: 1, 8, 128>}, {transform_indices = @transform_1, window_bounds = array<i64: 1, 8, 128>}, {pipeline_mode = #tpu.pipeline_mode<synchronous>, transform_indices = @transform_2, window_bounds = array<i64: 1, 128>}, {pipeline_mode = #tpu.pipeline_mode<synchronous>, transform_indices = @transform_3, window_bounds = array<i64: 1, 128>}, {pipeline_mode = #tpu.pipeline_mode<synchronous>, transform_indices = @transform_4, window_bounds = array<i64: 128, 128>}, {pipeline_mode = #tpu.pipeline_mode<synchronous>, transform_indices = @transform_5, window_bounds = array<i64: 128, 256>}, {pipeline_mode = #tpu.pipeline_mode<synchronous>, transform_indices = @transform_6, window_bounds = array<i64: 128, 128>}, {pipeline_mode = #tpu.pipeline_mode<synchronous>, transform_indices = @transform_7, window_bounds = array<i64: 1, 128>}, {pipeline_mode = #tpu.pipeline_mode<synchronous>, transform_indices = @transform_8, window_bounds = array<i64: 1, 128>}, {pipeline_mode = #tpu.pipeline_mode<synchronous>, transform_indices = @transform_9, window_bounds = array<i64: 1, 128>}, {pipeline_mode = #tpu.pipeline_mode<synchronous>, transform_indices = @transform_10, window_bounds = array<i64: 128, 512>}, {pipeline_mode = #tpu.pipeline_mode<synchronous>, transform_indices = @transform_11, window_bounds = array<i64: 1, 512>}, {pipeline_mode = #tpu.pipeline_mode<synchronous>, transform_indices = @transform_12, window_bounds = array<i64: 512, 128>}, {pipeline_mode = #tpu.pipeline_mode<synchronous>, transform_indices = @transform_13, window_bounds = array<i64: 1, 128>}, {transform_indices = @transform_14, window_bounds = array<i64: 1, 8, 128>}]} {
    %c0 = arith.constant 0 : index
    %c0_0 = arith.constant 0 : index
    %c0_1 = arith.constant 0 : index
    %0 = vector.load %arg2[%c0, %c0_0, %c0_1] : memref<1x8x128xf32, #tpu.memory_space<vmem>>, vector<1x8x128xf32>
    %1 = vector.shape_cast %0 : vector<1x8x128xf32> to vector<8x128xf32>
    %c0_2 = arith.constant 0 : index
    %c0_3 = arith.constant 0 : index
    %c0_4 = arith.constant 0 : index
    %2 = vector.load %arg3[%c0_2, %c0_3, %c0_4] : memref<1x8x128xf32, #tpu.memory_space<vmem>>, vector<1x8x128xf32>
    %3 = vector.shape_cast %2 : vector<1x8x128xf32> to vector<8x128xf32>
    %c0_5 = arith.constant 0 : index
    %c0_6 = arith.constant 0 : index
    %4 = vector.load %arg4[%c0_5, %c0_6] : memref<1x128xf32, #tpu.memory_space<vmem>>, vector<1x128xf32>
    %c0_7 = arith.constant 0 : index
    %c0_8 = arith.constant 0 : index
    %5 = vector.load %arg5[%c0_7, %c0_8] : memref<1x128xf32, #tpu.memory_space<vmem>>, vector<1x128xf32>
    %cst = arith.constant dense<0.000000e+00> : vector<8xf32>
    %6 = vector.multi_reduction <add>, %1, %cst [1] : vector<8x128xf32> to vector<8xf32>
    %7 = vector.shape_cast %6 : vector<8xf32> to vector<8x1xf32>
    %cst_9 = arith.constant 1.280000e+02 : f32
    %8 = vector.broadcast %cst_9 : f32 to vector<8x1xf32>
    %9 = arith.divf %7, %8 : vector<8x1xf32>
    %10 = vector.broadcast %9 : vector<8x1xf32> to vector<8x128xf32>
    %11 = arith.subf %1, %10 : vector<8x128xf32>
    %12 = arith.mulf %11, %11 : vector<8x128xf32>
    %cst_10 = arith.constant dense<0.000000e+00> : vector<8xf32>
    %13 = vector.multi_reduction <add>, %12, %cst_10 [1] : vector<8x128xf32> to vector<8xf32>
    %14 = vector.shape_cast %13 : vector<8xf32> to vector<8x1xf32>
    %cst_11 = arith.constant 1.280000e+02 : f32
    %15 = vector.broadcast %cst_11 : f32 to vector<8x1xf32>
    %16 = arith.divf %14, %15 : vector<8x1xf32>
    %17 = vector.broadcast %9 : vector<8x1xf32> to vector<8x128xf32>
    %18 = arith.subf %1, %17 : vector<8x128xf32>
    %cst_12 = arith.constant 9.99999974E-6 : f32
    %19 = vector.broadcast %cst_12 : f32 to vector<8x1xf32>
    %20 = arith.addf %16, %19 : vector<8x1xf32>
    %21 = math.rsqrt %20 : vector<8x1xf32>
    %22 = vector.broadcast %21 : vector<8x1xf32> to vector<8x128xf32>
    %23 = arith.mulf %18, %22 : vector<8x128xf32>
    %24 = vector.broadcast %4 : vector<1x128xf32> to vector<8x128xf32>
    %25 = arith.mulf %23, %24 : vector<8x128xf32>
    %26 = vector.broadcast %5 : vector<1x128xf32> to vector<8x128xf32>
    %27 = arith.addf %25, %26 : vector<8x128xf32>
    %cst_13 = arith.constant dense<0.000000e+00> : vector<8xf32>
    %28 = vector.multi_reduction <add>, %3, %cst_13 [1] : vector<8x128xf32> to vector<8xf32>
    %29 = vector.shape_cast %28 : vector<8xf32> to vector<8x1xf32>
    %cst_14 = arith.constant 1.280000e+02 : f32
    %30 = vector.broadcast %cst_14 : f32 to vector<8x1xf32>
    %31 = arith.divf %29, %30 : vector<8x1xf32>
    %32 = vector.broadcast %31 : vector<8x1xf32> to vector<8x128xf32>
    %33 = arith.subf %3, %32 : vector<8x128xf32>
    %34 = arith.mulf %33, %33 : vector<8x128xf32>
    %cst_15 = arith.constant dense<0.000000e+00> : vector<8xf32>
    %35 = vector.multi_reduction <add>, %34, %cst_15 [1] : vector<8x128xf32> to vector<8xf32>
    %36 = vector.shape_cast %35 : vector<8xf32> to vector<8x1xf32>
    %cst_16 = arith.constant 1.280000e+02 : f32
    %37 = vector.broadcast %cst_16 : f32 to vector<8x1xf32>
    %38 = arith.divf %36, %37 : vector<8x1xf32>
    %39 = vector.broadcast %31 : vector<8x1xf32> to vector<8x128xf32>
    %40 = arith.subf %3, %39 : vector<8x128xf32>
    %cst_17 = arith.constant 9.99999974E-6 : f32
    %41 = vector.broadcast %cst_17 : f32 to vector<8x1xf32>
    %42 = arith.addf %38, %41 : vector<8x1xf32>
    %43 = math.rsqrt %42 : vector<8x1xf32>
    %44 = vector.broadcast %43 : vector<8x1xf32> to vector<8x128xf32>
    %45 = arith.mulf %40, %44 : vector<8x128xf32>
    %46 = vector.broadcast %4 : vector<1x128xf32> to vector<8x128xf32>
    %47 = arith.mulf %45, %46 : vector<8x128xf32>
    %48 = vector.broadcast %5 : vector<1x128xf32> to vector<8x128xf32>
    %49 = arith.addf %47, %48 : vector<8x128xf32>
    %50 = arith.truncf %27 : vector<8x128xf32> to vector<8x128xbf16>
    %c0_18 = arith.constant 0 : index
    %c0_19 = arith.constant 0 : index
    %51 = vector.load %arg6[%c0_18, %c0_19] : memref<128x128xbf16, #tpu.memory_space<vmem>>, vector<128x128xbf16>
    %cst_20 = arith.constant dense<0.000000e+00> : vector<8x128xf32>
    %52 = tpu.matmul %50, %51, %cst_20 {dimension_numbers = #tpu.dot_dimension_numbers<[1], [0], [0], [1], [0, 0, 1, 1], [], []>} : vector<8x128xbf16>, vector<128x128xbf16>, vector<8x128xf32> -> vector<8x128xf32>
    %53 = arith.truncf %49 : vector<8x128xf32> to vector<8x128xbf16>
    %c0_21 = arith.constant 0 : index
    %c0_22 = arith.constant 0 : index
    %54 = vector.load %arg7[%c0_21, %c0_22] : memref<128x256xbf16, #tpu.memory_space<vmem>>, vector<128x256xbf16>
    %cst_23 = arith.constant dense<0.000000e+00> : vector<8x256xf32>
    %55 = tpu.matmul %53, %54, %cst_23 {dimension_numbers = #tpu.dot_dimension_numbers<[1], [0], [0], [1], [0, 0, 1, 1], [], []>} : vector<8x128xbf16>, vector<128x256xbf16>, vector<8x256xf32> -> vector<8x256xf32>
    %56 = vector.extract_strided_slice %55 {offsets = [0, 0], sizes = [8, 128], strides = [1, 1]} : vector<8x256xf32> to vector<8x128xf32>
    %57 = vector.extract_strided_slice %55 {offsets = [0, 128], sizes = [8, 128], strides = [1, 1]} : vector<8x256xf32> to vector<8x128xf32>
    %58 = vector.shape_cast %52 : vector<8x128xf32> to vector<8x4x32xf32>
    %59 = tpu.transpose %58, [1, 0, 2] : vector<8x4x32xf32> -> vector<4x8x32xf32>
    %60 = arith.truncf %59 : vector<4x8x32xf32> to vector<4x8x32xbf16>
    %61 = vector.shape_cast %56 : vector<8x128xf32> to vector<8x4x32xf32>
    %62 = tpu.transpose %61, [1, 0, 2] : vector<8x4x32xf32> -> vector<4x8x32xf32>
    %63 = arith.truncf %62 : vector<4x8x32xf32> to vector<4x8x32xbf16>
    %64 = vector.shape_cast %57 : vector<8x128xf32> to vector<8x4x32xf32>
    %65 = tpu.transpose %64, [1, 0, 2] : vector<8x4x32xf32> -> vector<4x8x32xf32>
    %66 = arith.truncf %65 : vector<4x8x32xf32> to vector<4x8x32xbf16>
    "tpu.trace_start"() <{level = 10 : i32, message = "hqd,hkd->hqk"}> : () -> ()
    %cst_24 = arith.constant dense<0.000000e+00> : vector<4x8x8xf32>
    %67 = tpu.matmul %60, %63, %cst_24 {dimension_numbers = #tpu.dot_dimension_numbers<[2], [2], [1], [1], [0, 0, 0, 1, 1, 1], [0], [0]>} : vector<4x8x32xbf16>, vector<4x8x32xbf16>, vector<4x8x8xf32> -> vector<4x8x8xf32>
    "tpu.trace_stop"() : () -> ()
    %cst_25 = arith.constant 0.176776692 : f32
    %68 = vector.broadcast %cst_25 : f32 to vector<4x8x8xf32>
    %69 = arith.mulf %67, %68 : vector<4x8x8xf32>
    %cst_26 = arith.constant dense<0xFF800000> : vector<4x8xf32>
    %70 = vector.multi_reduction <maximumf>, %69, %cst_26 [2] : vector<4x8x8xf32> to vector<4x8xf32>
    %71 = vector.shape_cast %70 : vector<4x8xf32> to vector<4x8x1xf32>
    %72 = vector.broadcast %71 : vector<4x8x1xf32> to vector<4x8x8xf32>
    %73 = arith.subf %69, %72 : vector<4x8x8xf32>
    %74 = math.exp %73 : vector<4x8x8xf32>
    %cst_27 = arith.constant dense<0.000000e+00> : vector<4x8xf32>
    %75 = vector.multi_reduction <add>, %74, %cst_27 [2] : vector<4x8x8xf32> to vector<4x8xf32>
    %76 = vector.shape_cast %75 : vector<4x8xf32> to vector<4x8x1xf32>
    %77 = tpu.reciprocal %76 {approx = true} : vector<4x8x1xf32> -> vector<4x8x1xf32>
    %78 = vector.broadcast %77 : vector<4x8x1xf32> to vector<4x8x8xf32>
    %79 = arith.mulf %74, %78 : vector<4x8x8xf32>
    %80 = arith.truncf %79 : vector<4x8x8xf32> to vector<4x8x8xbf16>
    "tpu.trace_start"() <{level = 10 : i32, message = "hqk,hkd->hqd"}> : () -> ()
    %cst_28 = arith.constant dense<0.000000e+00> : vector<4x8x32xf32>
    %81 = tpu.matmul %80, %66, %cst_28 {dimension_numbers = #tpu.dot_dimension_numbers<[2], [1], [1], [2], [0, 0, 0, 1, 1, 2], [0], [0]>} : vector<4x8x8xbf16>, vector<4x8x32xbf16>, vector<4x8x32xf32> -> vector<4x8x32xf32>
    "tpu.trace_stop"() : () -> ()
    %82 = tpu.transpose %81, [1, 0, 2] : vector<4x8x32xf32> -> vector<8x4x32xf32>
    %83 = vector.shape_cast %82 : vector<8x4x32xf32> to vector<8x128xf32>
    %84 = arith.truncf %83 : vector<8x128xf32> to vector<8x128xbf16>
    %c0_29 = arith.constant 0 : index
    %c0_30 = arith.constant 0 : index
    %85 = vector.load %arg8[%c0_29, %c0_30] : memref<128x128xbf16, #tpu.memory_space<vmem>>, vector<128x128xbf16>
    %cst_31 = arith.constant dense<0.000000e+00> : vector<8x128xf32>
    %86 = tpu.matmul %84, %85, %cst_31 {dimension_numbers = #tpu.dot_dimension_numbers<[1], [0], [0], [1], [0, 0, 1, 1], [], []>} : vector<8x128xbf16>, vector<128x128xbf16>, vector<8x128xf32> -> vector<8x128xf32>
    %c0_32 = arith.constant 0 : index
    %c0_33 = arith.constant 0 : index
    %87 = vector.load %arg9[%c0_32, %c0_33] : memref<1x128xf32, #tpu.memory_space<vmem>>, vector<1x128xf32>
    %88 = vector.broadcast %87 : vector<1x128xf32> to vector<8x128xf32>
    %89 = arith.addf %86, %88 : vector<8x128xf32>
    %90 = arith.addf %1, %89 : vector<8x128xf32>
    %c0_34 = arith.constant 0 : index
    %c0_35 = arith.constant 0 : index
    %91 = vector.load %arg10[%c0_34, %c0_35] : memref<1x128xf32, #tpu.memory_space<vmem>>, vector<1x128xf32>
    %c0_36 = arith.constant 0 : index
    %c0_37 = arith.constant 0 : index
    %92 = vector.load %arg11[%c0_36, %c0_37] : memref<1x128xf32, #tpu.memory_space<vmem>>, vector<1x128xf32>
    %cst_38 = arith.constant dense<0.000000e+00> : vector<8xf32>
    %93 = vector.multi_reduction <add>, %90, %cst_38 [1] : vector<8x128xf32> to vector<8xf32>
    %94 = vector.shape_cast %93 : vector<8xf32> to vector<8x1xf32>
    %cst_39 = arith.constant 1.280000e+02 : f32
    %95 = vector.broadcast %cst_39 : f32 to vector<8x1xf32>
    %96 = arith.divf %94, %95 : vector<8x1xf32>
    %97 = vector.broadcast %96 : vector<8x1xf32> to vector<8x128xf32>
    %98 = arith.subf %90, %97 : vector<8x128xf32>
    %99 = arith.mulf %98, %98 : vector<8x128xf32>
    %cst_40 = arith.constant dense<0.000000e+00> : vector<8xf32>
    %100 = vector.multi_reduction <add>, %99, %cst_40 [1] : vector<8x128xf32> to vector<8xf32>
    %101 = vector.shape_cast %100 : vector<8xf32> to vector<8x1xf32>
    %cst_41 = arith.constant 1.280000e+02 : f32
    %102 = vector.broadcast %cst_41 : f32 to vector<8x1xf32>
    %103 = arith.divf %101, %102 : vector<8x1xf32>
    %104 = vector.broadcast %96 : vector<8x1xf32> to vector<8x128xf32>
    %105 = arith.subf %90, %104 : vector<8x128xf32>
    %cst_42 = arith.constant 9.99999974E-6 : f32
    %106 = vector.broadcast %cst_42 : f32 to vector<8x1xf32>
    %107 = arith.addf %103, %106 : vector<8x1xf32>
    %108 = math.rsqrt %107 : vector<8x1xf32>
    %109 = vector.broadcast %108 : vector<8x1xf32> to vector<8x128xf32>
    %110 = arith.mulf %105, %109 : vector<8x128xf32>
    %111 = vector.broadcast %91 : vector<1x128xf32> to vector<8x128xf32>
    %112 = arith.mulf %110, %111 : vector<8x128xf32>
    %113 = vector.broadcast %92 : vector<1x128xf32> to vector<8x128xf32>
    %114 = arith.addf %112, %113 : vector<8x128xf32>
    %115 = arith.truncf %114 : vector<8x128xf32> to vector<8x128xbf16>
    %c0_43 = arith.constant 0 : index
    %c0_44 = arith.constant 0 : index
    %116 = vector.load %arg12[%c0_43, %c0_44] : memref<128x512xbf16, #tpu.memory_space<vmem>>, vector<128x512xbf16>
    %cst_45 = arith.constant dense<0.000000e+00> : vector<8x512xf32>
    %117 = tpu.matmul %115, %116, %cst_45 {dimension_numbers = #tpu.dot_dimension_numbers<[1], [0], [0], [1], [0, 0, 1, 1], [], []>} : vector<8x128xbf16>, vector<128x512xbf16>, vector<8x512xf32> -> vector<8x512xf32>
    %c0_46 = arith.constant 0 : index
    %c0_47 = arith.constant 0 : index
    %118 = vector.load %arg13[%c0_46, %c0_47] : memref<1x512xf32, #tpu.memory_space<vmem>>, vector<1x512xf32>
    %119 = vector.broadcast %118 : vector<1x512xf32> to vector<8x512xf32>
    %120 = arith.addf %117, %119 : vector<8x512xf32>
    %cst_48 = arith.constant 0.000000e+00 : f32
    %121 = vector.broadcast %cst_48 : f32 to vector<8x512xf32>
    %122 = arith.maximumf %120, %121 : vector<8x512xf32>
    %123 = arith.truncf %122 : vector<8x512xf32> to vector<8x512xbf16>
    %c0_49 = arith.constant 0 : index
    %c0_50 = arith.constant 0 : index
    %124 = vector.load %arg14[%c0_49, %c0_50] : memref<512x128xbf16, #tpu.memory_space<vmem>>, vector<512x128xbf16>
    %cst_51 = arith.constant dense<0.000000e+00> : vector<8x128xf32>
    %125 = tpu.matmul %123, %124, %cst_51 {dimension_numbers = #tpu.dot_dimension_numbers<[1], [0], [0], [1], [0, 0, 1, 1], [], []>} : vector<8x512xbf16>, vector<512x128xbf16>, vector<8x128xf32> -> vector<8x128xf32>
    %c0_52 = arith.constant 0 : index
    %c0_53 = arith.constant 0 : index
    %126 = vector.load %arg15[%c0_52, %c0_53] : memref<1x128xf32, #tpu.memory_space<vmem>>, vector<1x128xf32>
    %127 = vector.broadcast %126 : vector<1x128xf32> to vector<8x128xf32>
    %128 = arith.addf %125, %127 : vector<8x128xf32>
    %129 = arith.addf %90, %128 : vector<8x128xf32>
    %c0_54 = arith.constant 0 : index
    %c0_55 = arith.constant 0 : index
    %c0_56 = arith.constant 0 : index
    %130 = vector.load %arg16[%c0_54, %c0_55, %c0_56] : memref<1x8x128xf32, #tpu.memory_space<vmem>>, vector<1x8x128xf32>
    %131 = vector.shape_cast %130 : vector<1x8x128xf32> to vector<8x128xf32>
    %132 = vector.shape_cast %129 : vector<8x128xf32> to vector<1x8x128xf32>
    tpu.vector_store %arg16[%c0_54, %c0_55, %c0_56], %132 {strides = array<i32>} : memref<1x8x128xf32, #tpu.memory_space<vmem>>, vector<1x8x128xf32>,
    return
  }
  func.func @transform_0(%arg0: i32, %arg1: i32) -> (i32, i32, i32) {
    %c0_i32 = arith.constant 0 : i32
    %c0_i32_0 = arith.constant 0 : i32
    return %arg0, %arg1, %c0_i32 : i32, i32, i32
  }
  func.func @transform_1(%arg0: i32, %arg1: i32) -> (i32, i32, i32) {
    %c0_i32 = arith.constant 0 : i32
    %c0_i32_0 = arith.constant 0 : i32
    %c0_i32_1 = arith.constant 0 : i32
    return %arg0, %c0_i32, %c0_i32_0 : i32, i32, i32
  }
  func.func @transform_2(%arg0: i32, %arg1: i32) -> (i32, i32) {
    %c0_i32 = arith.constant 0 : i32
    %c0_i32_0 = arith.constant 0 : i32
    %c0_i32_1 = arith.constant 0 : i32
    return %c0_i32, %c0_i32_0 : i32, i32
  }
  func.func @transform_3(%arg0: i32, %arg1: i32) -> (i32, i32) {
    %c0_i32 = arith.constant 0 : i32
    %c0_i32_0 = arith.constant 0 : i32
    %c0_i32_1 = arith.constant 0 : i32
    return %c0_i32, %c0_i32_0 : i32, i32
  }
  func.func @transform_4(%arg0: i32, %arg1: i32) -> (i32, i32) {
    %c0_i32 = arith.constant 0 : i32
    %c0_i32_0 = arith.constant 0 : i32
    %c0_i32_1 = arith.constant 0 : i32
    return %c0_i32, %c0_i32_0 : i32, i32
  }
  func.func @transform_5(%arg0: i32, %arg1: i32) -> (i32, i32) {
    %c0_i32 = arith.constant 0 : i32
    %c0_i32_0 = arith.constant 0 : i32
    %c0_i32_1 = arith.constant 0 : i32
    return %c0_i32, %c0_i32_0 : i32, i32
  }
  func.func @transform_6(%arg0: i32, %arg1: i32) -> (i32, i32) {
    %c0_i32 = arith.constant 0 : i32
    %c0_i32_0 = arith.constant 0 : i32
    %c0_i32_1 = arith.constant 0 : i32
    return %c0_i32, %c0_i32_0 : i32, i32
  }
  func.func @transform_7(%arg0: i32, %arg1: i32) -> (i32, i32) {
    %c0_i32 = arith.constant 0 : i32
    %c0_i32_0 = arith.constant 0 : i32
    %c0_i32_1 = arith.constant 0 : i32
    return %c0_i32, %c0_i32_0 : i32, i32
  }
  func.func @transform_8(%arg0: i32, %arg1: i32) -> (i32, i32) {
    %c0_i32 = arith.constant 0 : i32
    %c0_i32_0 = arith.constant 0 : i32
    %c0_i32_1 = arith.constant 0 : i32
    return %c0_i32, %c0_i32_0 : i32, i32
  }
  func.func @transform_9(%arg0: i32, %arg1: i32) -> (i32, i32) {
    %c0_i32 = arith.constant 0 : i32
    %c0_i32_0 = arith.constant 0 : i32
    %c0_i32_1 = arith.constant 0 : i32
    return %c0_i32, %c0_i32_0 : i32, i32
  }
  func.func @transform_10(%arg0: i32, %arg1: i32) -> (i32, i32) {
    %c0_i32 = arith.constant 0 : i32
    %c0_i32_0 = arith.constant 0 : i32
    %c0_i32_1 = arith.constant 0 : i32
    return %c0_i32, %c0_i32_0 : i32, i32
  }
  func.func @transform_11(%arg0: i32, %arg1: i32) -> (i32, i32) {
    %c0_i32 = arith.constant 0 : i32
    %c0_i32_0 = arith.constant 0 : i32
    %c0_i32_1 = arith.constant 0 : i32
    return %c0_i32, %c0_i32_0 : i32, i32
  }
  func.func @transform_12(%arg0: i32, %arg1: i32) -> (i32, i32) {
    %c0_i32 = arith.constant 0 : i32
    %c0_i32_0 = arith.constant 0 : i32
    %c0_i32_1 = arith.constant 0 : i32
    return %c0_i32, %c0_i32_0 : i32, i32
  }
  func.func @transform_13(%arg0: i32, %arg1: i32) -> (i32, i32) {
    %c0_i32 = arith.constant 0 : i32
    %c0_i32_0 = arith.constant 0 : i32
    %c0_i32_1 = arith.constant 0 : i32
    return %c0_i32, %c0_i32_0 : i32, i32
  }
  func.func @transform_14(%arg0: i32, %arg1: i32) -> (i32, i32, i32) {
    %c0_i32 = arith.constant 0 : i32
    %c0_i32_0 = arith.constant 0 : i32
    return %arg0, %arg1, %c0_i32 : i32, i32, i32
  }
}

</mosaic_0001>

<bundles_post_ra>
// kernel: tpu_custom_call.1
= control target key start
LH: loop header
LB: loop body
LE: loop exit
PB: predicated region body
PF: predicated region fallthrough
CT: control target
= control target key end

     0   :  { %s4442_s0 = inlined_call_operand.hbm [shape: f32[2,8,128], index: 0, kind: input, shape index: {}]   ;;  %s4443_s1 = inlined_call_operand.hbm [shape: f32[2,8,128], index: 1, kind: input, shape index: {}]   ;;  %s4444_s2 = inlined_call_operand.vmem [shape: f32[1,128], index: 2, kind: input, shape index: {}]   ;;  %s4445_s3 = inlined_call_operand.vmem [shape: f32[1,128], index: 3, kind: input, shape index: {}]   ;;  %s4446_s4 = inlined_call_operand.hbm [shape: bf16[128,128], index: 4, kind: input, shape index: {}]   ;;  %s4447_s5 = inlined_call_operand.hbm [shape: bf16[128,256], index: 5, kind: input, shape index: {}]   ;;  %s4448_s6 = inlined_call_operand.hbm [shape: bf16[128,128], index: 6, kind: input, shape index: {}]   ;;  %s4449_s7 = inlined_call_operand.vmem [shape: f32[1,128], index: 7, kind: input, shape index: {}]   ;;  %s4450_s8 = inlined_call_operand.vmem [shape: f32[1,128], index: 8, kind: input, shape index: {}]   ;;  %s4451_s9 = inlined_call_operand.vmem [shape: f32[1,128], index: 9, kind: input, shape index: {}]   ;;  %s4452_s10 = inlined_call_operand.hbm [shape: bf16[128,512], index: 10, kind: input, shape index: {}]   ;;  %s4453_s11 = inlined_call_operand.vmem [shape: f32[1,512], index: 11, kind: input, shape index: {}]   ;;  %s4454_s12 = inlined_call_operand.hbm [shape: bf16[512,128], index: 12, kind: input, shape index: {}]   ;;  %s4455_s13 = inlined_call_operand.vmem [shape: f32[1,128], index: 13, kind: input, shape index: {}]   ;;  %s4456_s14 = inlined_call_operand.hbm [shape: f32[2,8,128], index: 14, kind: output, shape index: {}]  }
   0x1   :  { %4466 = sst [smem:[#allocation22_spill]] %s4445_s3 }
   0x2   :  { %4467 = sst [smem:[#allocation23_spill]] %s4446_s4 }
   0x3   :  { %4468 = sst [smem:[#allocation24_spill]] %s4447_s5 }
   0x4   :  { %4469 = sst [smem:[#allocation25_spill]] %s4448_s6 }
   0x5   :  { %4470 = sst [smem:[#allocation26_spill]] %s4449_s7 }
   0x6   :  { %4471 = sst [smem:[#allocation27_spill]] %s4450_s8 }
   0x7   :  { %4472 = sst [smem:[#allocation28_spill]] %s4451_s9 }
   0x8   :  { %4473 = sst [smem:[#allocation29_spill]] %s4452_s10 }
   0x9   :  { %4474 = sst [smem:[#allocation30_spill]] %s4453_s11 }
   0xa   :  { %4475 = sst [smem:[#allocation31_spill]] %s4454_s12 }
   0xb   :  { %4476 = sst [smem:[#allocation32_spill]] %s4455_s13 }
   0xc   :  { %4477 = sst [smem:[#allocation33_spill]] %s4456_s14 }
   0xd   :  { %19 = vsyncpa [#allocation3], 0 }
   0xe   :  { %21 = vsyncpa [#allocation3 + $0x1], 0 }
   0xf   :  { %22 = vsyncpa [#allocation6], 0 }
  0x10   :  { %24 = vsyncpa [#allocation6 + $0x1], 0 }
  0x11   :  { %25 = vsyncpa [#allocation9], 0 }
  0x12   :  { %26 = vsyncpa [#allocation12], 0 }
  0x13   :  { %27 = vsyncpa [#allocation4], 0 }
  0x14   :  { %29 = vsyncpa [#allocation4 + $0x1], 0  ;;  %s3859_s29 = smov 0   ;;  %s3861_s30 = smov 0  }
  0x15   :  { %s3863_s15 = smov 0   ;;  %s3865_s16 = smov 0  }
  0x16   :  { %s3867_s17 = smov 0   ;;  %s3869_s18 = smov 0  }
  0x17 LB: > { %4478 = sst [smem:[#allocation21_spill]] %s3752_s16  ;;  %s3890_s19 = sadd.s32 4294967295, %s3760_s18   ;;  %s3760_s18 = sphi %s3869_s18, %s35_s18   ;;  %s3756_s17 = sphi %s3867_s17, %s4518_s17   ;;  %s3752_s16 = sphi %s3865_s16, %s4517_s16   ;;  %s3748_s15 = sphi %s3863_s15, %s4516_s15   ;;  %s3744_s30 = sphi %s3861_s30, %s4515_s30   ;;  %s3740_s29 = sphi %s3859_s29, %s4514_s29  }
  0x18   : > { %p2879_p0 = scmp.ge.s32.totalorder %s3760_s18, 1  ;;  %p4462_p1 = scmp.eq.s32.totalorder %s3890_s19, 0 }
  0x19   : > { %p386_p2 = scmp.lt.s32.totalorder %s3760_s18, 3  ;;  %s3762_s21 = smov [#allocation7]  }
  0x1a   : > { %s404_s22 = sshll.u32 %s3762_s21, 4  ;;  %s3763_s24 = smov [#allocation8]   ;;  %s3899_s22 = int_to_ptr.vmem [resolvable:$true] %s404_s22 }
  0x1b   : > { %p3895_p3 = pnand %p2879_p0, %p386_p2  ;;  %s417_s25 = sshll.u32 %s3763_s24, 4  ;;  %s3910_s25 = int_to_ptr.vmem [resolvable:$true] %s417_s25 }
  0x1c   : > { %s4481_s4 = sld [smem:[#allocation23_spill]] }
  0x1d   : > { %s4479_s20 = scalar_select %p3895_p3, 1, 0 }
  0x1e   : > { %p3213_p4 = pneg %p3895_p3 }
  0x20   : > { %p3906_p6 = pnand %p3213_p4, %p4462_p1 }
  0x22   : > { %s3462_s28 = scalar_lea.hbm %s4481_s4, 1024  ;;  %p3920_p8 = pneg %p3906_p6 }
  0x23   : > { %p3463_p7 = scmp.ne.s32.totalorder %s4481_s4, %s3462_s28  ;;  %p3469_p11 = scmp.lt.u32.totalorder %s3462_s28, %s4481_s4 }
  0x25   : > { %p3465_p9 = pnand %p3920_p8, %p3463_p7 }
  0x27   : > { %p3466_p10 = pneg %p3465_p9 }
  0x29   : > { %p3471_p12 = pnand %p3469_p11, %p3466_p10 }
  0x2b   : > { %3474 = shalt.err (!%p3471_p12)
}
  0x2c   : > { %s3475_s14 = scalar_lea.vmem %s3899_s22, 1024  ;;  %p3483_p4 = scmp.lt.s32.totalorder %s3899_s22, %s3899_s22 }
  0x2d   : > { %p3476_p13 = scmp.ne.s32.totalorder %s3899_s22, %s3475_s14  ;;  %p3484_p5 = scmp.lt.s32.totalorder %s3475_s14, %s3475_s14 }
  0x2f   : > { %p3478_p0 = pnand %p3476_p13, %p3920_p8  ;;  %p3485_p7 = por %p3484_p5, %p3483_p4 }
  0x31   : > { %p3479_p2 = pneg %p3478_p0 }
  0x33   : > { %p3486_p9 = pnand %p3485_p7, %p3479_p2 }
  0x35   : > { %3489 = shalt.err (!%p3486_p9)
}
  0x36   : > { %s4458_s26 = smov 64   ;;  %s4460_s16 = smov 4  }
  0x37   : > { %3216 = dma.hbm_to_vmem [thread:$0]  (!%p3906_p6), %s4481_s4, 1024, %s3899_s22, [#allocation6], %s4458_s26, %s4458_s26, %s4460_s16  }
  0x38   : > { %s4483_s5 = sld [smem:[#allocation24_spill]] }
  0x3e   : > { %s3490_s14 = scalar_lea.hbm %s4483_s5, 2048 }
  0x3f   : > { %p3491_p5 = scmp.ne.s32.totalorder %s4483_s5, %s3490_s14  ;;  %p3497_p12 = scmp.lt.u32.totalorder %s3490_s14, %s4483_s5 }
  0x41   : > { %p3493_p10 = pnand %p3491_p5, %p3920_p8 }
  0x43   : > { %p3494_p11 = pneg %p3493_p10 }
  0x45   : > { %p3499_p13 = pnand %p3497_p12, %p3494_p11 }
  0x47   : > { %3502 = shalt.err (!%p3499_p13)
}
  0x48   : > { %s3503_s22 = scalar_lea.vmem %s3910_s25, 2048  ;;  %p3511_p7 = scmp.lt.s32.totalorder %s3910_s25, %s3910_s25 }
  0x49   : > { %p3504_p0 = scmp.ne.s32.totalorder %s3910_s25, %s3503_s22  ;;  %p3512_p9 = scmp.lt.s32.totalorder %s3503_s22, %s3503_s22 }
  0x4b   : > { %p3506_p2 = pnand %p3504_p0, %p3920_p8  ;;  %p3513_p5 = por %p3512_p9, %p3511_p7 }
  0x4d   : > { %p3507_p4 = pneg %p3506_p2 }
  0x4f   : > { %p3514_p10 = pnand %p3513_p5, %p3507_p4 }
  0x51   : > { %3517 = shalt.err (!%p3514_p10)
}
  0x52   : > { %s3766_s9 = smov 128   ;;  %s3767_s7 = smov 8  }
  0x53   : > { %3219 = dma.hbm_to_vmem [thread:$0]  (!%p3906_p6), %s4483_s5, 2048, %s3910_s25, [#allocation9], %s3766_s9, %s3766_s9, %s3767_s7  }
  0x54   : > { %s3768_s27 = smov [#allocation11]   ;;  %s4484_s10 = sld [smem:[#allocation29_spill]] }
  0x55   : > { %s452_s28 = sshll.u32 %s3768_s27, 4  ;;  %s453_s28 = int_to_ptr.vmem [resolvable:$true] %s452_s28 }
  0x5a   : > { %s3518_s14 = scalar_lea.hbm %s4484_s10, 4096 }
  0x5b   : > { %p3519_p11 = scmp.ne.s32.totalorder %s4484_s10, %s3518_s14  ;;  %p3525_p0 = scmp.lt.u32.totalorder %s3518_s14, %s4484_s10 }
  0x5d   : > { %p3521_p12 = pnand %p3519_p11, %p3920_p8 }
  0x5f   : > { %p3522_p13 = pneg %p3521_p12 }
  0x61   : > { %p3527_p2 = pnand %p3525_p0, %p3522_p13 }
  0x63   : > { %3530 = shalt.err (!%p3527_p2)
}
  0x64   : > { %s3531_s25 = scalar_lea.vmem %s453_s28, 4096  ;;  %p3539_p5 = scmp.lt.s32.totalorder %s453_s28, %s453_s28 }
  0x65   : > { %p3532_p4 = scmp.ne.s32.totalorder %s453_s28, %s3531_s25  ;;  %p3540_p10 = scmp.lt.s32.totalorder %s3531_s25, %s3531_s25 }
  0x67   : > { %p3534_p7 = pnand %p3532_p4, %p3920_p8  ;;  %p3541_p1 = por %p3540_p10, %p3539_p5 }
  0x69   : > { %p3535_p9 = pneg %p3534_p7 }
  0x6b   : > { %p3542_p3 = pnand %p3541_p1, %p3535_p9 }
  0x6d   : > { %3545 = shalt.err (!%p3542_p3)
}
  0x6e   : > { %s3769_s26 = smov 256   ;;  %s3770_s9 = smov 16  }
  0x6f   : > { %3225 = dma.hbm_to_vmem [thread:$0]  (!%p3906_p6), %s4484_s10, 4096, %s453_s28, [#allocation12], %s3769_s26, %s3769_s26, %s3770_s9  }
  0x70   : > { %s3771_s7 = smov [#allocation10]   ;;  %s3772_s11 = smov [#allocation13]  }
  0x71   : > { %s430_s8 = sshll.u32 %s3771_s7, 4  ;;  %s468_s27 = sshll.u32 %s3772_s11, 4  ;;  %s431_s8 = int_to_ptr.vmem [resolvable:$true] %s430_s8  ;;  %s469_s27 = int_to_ptr.vmem [resolvable:$true] %s468_s27 }
  0x72   : > { %s4485_s6 = sld [smem:[#allocation25_spill]] }
  0x78   : > { %s3546_s14 = scalar_lea.hbm %s4485_s6, 1024 }
  0x79   : > { %p3547_p1 = scmp.ne.s32.totalorder %s4485_s6, %s3546_s14  ;;  %p3553_p12 = scmp.lt.u32.totalorder %s3546_s14, %s4485_s6 }
  0x7b   : > { %p3549_p3 = pnand %p3547_p1, %p3920_p8 }
  0x7d   : > { %p3550_p11 = pneg %p3549_p3 }
  0x7f   : > { %p3555_p13 = pnand %p3553_p12, %p3550_p11 }
  0x81   : > { %3558 = shalt.err (!%p3555_p13)
}
  0x82   : > { %s3559_s28 = scalar_lea.vmem %s431_s8, 1024  ;;  %p3567_p7 = scmp.lt.s32.totalorder %s431_s8, %s431_s8 }
  0x83   : > { %p3560_p0 = scmp.ne.s32.totalorder %s431_s8, %s3559_s28  ;;  %p3568_p9 = scmp.lt.s32.totalorder %s3559_s28, %s3559_s28 }
  0x85   : > { %p3562_p2 = pnand %p3560_p0, %p3920_p8  ;;  %p3569_p5 = por %p3568_p9, %p3567_p7 }
  0x87   : > { %p3563_p4 = pneg %p3562_p2 }
  0x89   : > { %p3570_p10 = pnand %p3569_p5, %p3563_p4 }
  0x8b   : > { %3573 = shalt.err (!%p3570_p10)
}
  0x8c   : > { %s4486_s26 = smov 4   ;;  %s4487_s9 = smov 64  }
  0x8d   : > { %3222 = dma.hbm_to_vmem [thread:$0]  (!%p3906_p6), %s4485_s6, 1024, %s431_s8, [#allocation9], %s4487_s9, %s4487_s9, %s4486_s26  }
  0x8e   : > { %s4488_s12 = sld [smem:[#allocation31_spill]] }
  0x94   : > { %s3574_s7 = scalar_lea.hbm %s4488_s12, 4096 }
  0x95   : > { %p3575_p1 = scmp.ne.s32.totalorder %s4488_s12, %s3574_s7  ;;  %p3581_p12 = scmp.lt.u32.totalorder %s3574_s7, %s4488_s12 }
  0x97   : > { %p3577_p3 = pnand %p3575_p1, %p3920_p8 }
  0x99   : > { %p3578_p11 = pneg %p3577_p3 }
  0x9b   : > { %p3583_p13 = pnand %p3581_p12, %p3578_p11 }
  0x9d   : > { %3586 = shalt.err (!%p3583_p13)
}
  0x9e   : > { %s3587_s22 = scalar_lea.vmem %s469_s27, 4096  ;;  %p3595_p7 = scmp.lt.s32.totalorder %s469_s27, %s469_s27 }
  0x9f   : > { %p3588_p0 = scmp.ne.s32.totalorder %s469_s27, %s3587_s22  ;;  %p3596_p9 = scmp.lt.s32.totalorder %s3587_s22, %s3587_s22 }
  0xa1   : > { %p3590_p2 = pnand %p3588_p0, %p3920_p8  ;;  %p3597_p5 = por %p3596_p9, %p3595_p7 }
  0xa3   : > { %p3591_p4 = pneg %p3590_p2 }
  0xa5   : > { %p3598_p10 = pnand %p3597_p5, %p3591_p4 }
  0xa7   : > { %3601 = shalt.err (!%p3598_p10)
}
  0xa8   : > { %3228 = dma.hbm_to_vmem [thread:$0]  (!%p3906_p6), %s4488_s12, 4096, %s469_s27, [#allocation12], %s4487_s9, %s4487_s9, %s4486_s26  }
  0xa9   : > { %s2878_s13 = sadd.s32 4294967294, %s3760_s18   ;;  %s47_s23 = sadd.s32 1, %s3756_s17 }
  0xaa   : > { %s56_s28 = sadd.s32 1, %s3748_s15  ;;  %p49_p8 = scmp.ge.s32.totalorder %s47_s23, 2 }
  0xab   : > { %p63_p1 = scmp.ne.s32.totalorder %s3748_s15, %s3744_s30  ;;  %p64_p3 = scmp.eq.s32.totalorder %s3760_s18, 0 }
  0xac   : > { %p69_p11 = scmp.ne.s32.totalorder %s3744_s30, %s3740_s29  ;;  %s4520_s23 = smov (%p49_p8, %s47_s23), 0 }
  0xad   : > { %p4037_p12 = por %p64_p3, %p63_p1  ;;  %p4490_p13 = scmp.eq.s32.totalorder %s3890_s19, 0 }
  0xae   : > { %s51_s26 = ssub.s32 %s3756_s17, %s4520_s23  ;;  %p373_p0 = scmp.eq.s32.totalorder %s3890_s19, 1 }
  0xaf   : > { %p4043_p6 = por %p4490_p13, %p69_p11  ;;  %p54_p2 = scmp.eq.s32.totalorder %s51_s26, 0 }
  0xb0   : > { %p379_p4 = scmp.eq.s32.totalorder %s2878_s13, 1  ;;  %p4050_p7 = por %p373_p0, %p63_p1 }
  0xb1   : > { %s4491_s27 = scalar_select %p4043_p6, 1, 0 }
  0xb2   : > { %s4492_s9 = scalar_select %p4050_p7, 1, 0 }
  0xb3   : > { %p3245_p9 = scmp.lt.s32.totalorder %s3760_s18, 2  ;;  %p4058_p5 = por %p379_p4, %p69_p11 }
  0xb4   : > { %s4056_s5 = scalar_select %p54_p2, %s3748_s15, %s56_s28  }
  0xb5   : > { %s4493_s4 = scalar_select %p4058_p5, 1, 0 }
  0xb6   : > { %s485_s16 = sand.u32 1, %s3748_s15   ;;  %s2887_s11 = sshll.u32 %s3756_s17, 7 }
  0xb7   : > { %s4063_s7 = sshll.u32 %s485_s16, 3  ;;  %s4069_s14 = scalar_lea.hbm %s4442_s0, %s2887_s11 }
  0xb8   : > { %s489_s22 = scalar_lea.vmem [#allocation2], %s4063_s7  ;;  %p4076_p10 = pnand %p3245_p9, %p4037_p12 }
  0xb9   : > { %s497_s8 = sshll.u32 %s489_s22, 4  ;;  %s4083_s26 = scalar_lea.hbm %s4443_s1, %s2887_s11  ;;  %s4072_s8 = int_to_ptr.vmem [resolvable:$true] %s497_s8 }
  0xba   : > { %s504_s21 = sand.u32 1, %s3760_s18   ;;  %s486_s24 = scalar_lea.sflag [#allocation3], %s485_s16 }
  0xbb   : > { %s3602_s6 = scalar_lea.hbm %s4069_s14, 128  ;;  %p3604_p1 = pneg %p4076_p10 }
  0xbc   : > { %p3603_p8 = scmp.ne.s32.totalorder %s4069_s14, %s3602_s6  ;;  %s3607_s10 = scalar_lea.hbm %s4442_s0, 256 }
  0xbd   : > { %p3608_p12 = scmp.lt.u32.totalorder %s4069_s14, %s4442_s0  ;;  %p3609_p13 = scmp.lt.u32.totalorder %s3607_s10, %s3602_s6 }
  0xbe   : > { %p3605_p3 = pnand %p3604_p1, %p3603_p8  ;;  %p3611_p2 = scmp.lt.u32.totalorder %s3602_s6, %s4069_s14 }
  0xbf   : > { %p3610_p0 = por %p3609_p13, %p3608_p12 }
  0xc0   : > { %p3606_p11 = pneg %p3605_p3 }
  0xc1   : > { %p3612_p4 = por %p3611_p2, %p3610_p0 }
  0xc3   : > { %p3613_p9 = pnand %p3612_p4, %p3606_p11 }
  0xc5   : > { %3616 = shalt.err (!%p3613_p9)
}
  0xc6   : > { %s3617_s16 = scalar_lea.vmem %s4072_s8, 128  ;;  %s3773_s11 = smov [#allocation2]  }
  0xc7   : > { %p3618_p8 = scmp.ne.s32.totalorder %s4072_s8, %s3617_s16  ;;  %s3622_s28 = sshll.u32 %s3773_s11, 4  ;;  %s3623_s28 = int_to_ptr.vmem [resolvable:$false] %s3622_s28 }
  0xc8   : > { %s3624_s12 = scalar_lea.vmem %s3623_s28, 256  ;;  %p3625_p7 = scmp.lt.s32.totalorder %s4072_s8, %s3623_s28 }
  0xc9   : > { %p3620_p3 = pnand %p3618_p8, %p3604_p1  ;;  %p3626_p12 = scmp.lt.s32.totalorder %s3624_s12, %s3617_s16 }
  0xcb   : > { %p3621_p5 = pneg %p3620_p3  ;;  %p3627_p13 = por %p3626_p12, %p3625_p7 }
  0xcd   : > { %p3628_p0 = pnand %p3627_p13, %p3621_p5 }
  0xcf   : > { %3631 = shalt.err (!%p3628_p0)
}
  0xd0   : > { %3232 = dma.hbm_to_vmem [thread:$0]  (!%p4076_p10), %s4069_s14, 128, %s4072_s8, %s486_s24  }
  0xd1   : > { %s508_s6 = scalar_lea.vmem [#allocation5], %s4063_s7  ;;  %s505_s3 = scalar_lea.sflag [#allocation6], %s504_s21 }
  0xd2   : > { %s515_s10 = sshll.u32 %s508_s6, 4  ;;  %s3632_s22 = scalar_lea.hbm %s4083_s26, 128  ;;  %s516_s10 = int_to_ptr.vmem [resolvable:$true] %s515_s10 }
  0xd3   : > { %p3633_p7 = scmp.ne.s32.totalorder %s4083_s26, %s3632_s22  ;;  %s3637_s11 = scalar_lea.hbm %s4443_s1, 256 }
  0xd4   : > { %p3638_p2 = scmp.lt.u32.totalorder %s4083_s26, %s4443_s1  ;;  %p3639_p4 = scmp.lt.u32.totalorder %s3637_s11, %s3632_s22 }
  0xd5   : > { %p3635_p5 = pnand %p3633_p7, %p3604_p1  ;;  %p3641_p8 = scmp.lt.u32.totalorder %s3632_s22, %s4083_s26 }
  0xd6   : > { %p3640_p9 = por %p3639_p4, %p3638_p2 }
  0xd7   : > { %p3636_p11 = pneg %p3635_p5 }
  0xd8   : > { %p3642_p3 = por %p3641_p8, %p3640_p9 }
  0xda   : > { %p3643_p12 = pnand %p3642_p3, %p3636_p11 }
  0xdc   : > { %3646 = shalt.err (!%p3643_p12)
}
  0xdd   : > { %s3647_s7 = scalar_lea.vmem %s516_s10, 128  ;;  %s3774_s14 = smov [#allocation5]  }
  0xde   : > { %p3648_p13 = scmp.ne.s32.totalorder %s516_s10, %s3647_s7  ;;  %s3652_s8 = sshll.u32 %s3774_s14, 4  ;;  %s3653_s8 = int_to_ptr.vmem [resolvable:$false] %s3652_s8 }
  0xdf   : > { %s3654_s21 = scalar_lea.vmem %s3653_s8, 256  ;;  %p3655_p5 = scmp.lt.s32.totalorder %s516_s10, %s3653_s8 }
  0xe0   : > { %p3650_p0 = pnand %p3648_p13, %p3604_p1  ;;  %p3656_p6 = scmp.lt.s32.totalorder %s3654_s21, %s3647_s7 }
  0xe2   : > { %p3651_p7 = pneg %p3650_p0  ;;  %p3657_p2 = por %p3656_p6, %p3655_p5 }
  0xe4   : > { %p3658_p4 = pnand %p3657_p2, %p3651_p7 }
  0xe6   : > { %3661 = shalt.err (!%p3658_p4)
}
  0xe7   : > { %3235 = dma.hbm_to_vmem [thread:$0]  (!%p4076_p10), %s4083_s26, 128, %s516_s10, %s505_s3  }
  0xe8   : > { %p4495_p11 = scmp.ne.s32.totalorder %s4479_s20, 0 }
  0xe9   : > { %s4136_s24 = sand.u32 (!%p4495_p11), 1, %s3744_s30   ;;  %p4496_p6 = scmp.ne.s32.totalorder (!%p4495_p11), %s4491_s27, 0 }
  0xea   : > { %524 = sbr.rel (%p4495_p11) target bundleno = 2856 (0xb28), region = 76  ;;  %s4139_s6 = sshll.u32 (!%p4495_p11), %s4136_s24, 3 }
  0xeb   : > { %s527_s22 = scalar_lea.sflag (!%p4495_p11), [#allocation3], %s4136_s24  ;;  %s530_s13 = scalar_lea.vmem (!%p4495_p11), [#allocation2], %s4139_s6 }
  0xf1   : > { %3715 = dma.done.wait (%p4496_p6), %s527_s22, 128  }
  0xf2   : > { %3717 = vsyncadd (%p4496_p6), %s527_s22, 4294967168  ;;  %s535_s20 = sand.u32 1, %s3890_s19   ;;  %s539_s26 = scalar_lea.vmem [#allocation5], %s4139_s6 }
  0xf3   : > { %s536_s25 = scalar_lea.sflag [#allocation6], %s535_s20 }
  0xf4   : > { %3719 = dma.done.wait (%p4496_p6), %s536_s25, 128  }
  0xf5   : > { %3721 = vsyncadd (%p4496_p6), %s536_s25, 4294967168  ;;  %p4497_p10 = scmp.eq.s32.totalorder %s3890_s19, 0 }
  0xf7   : > { %3723 = dma.done.wait (%p4497_p10), [#allocation6], 1024   ;;  %p4498_p1 = pmov %p4497_p10 }
  0xf9   : > { %3725 = vsyncadd (%p4498_p1), [#allocation6], 4294966272  ;;  %p4499_p9 = pmov %p4498_p1 }
  0xfa   : > { %p4500_p8 = pmov %p4498_p1 }
  0xfb   : > { %3727 = dma.done.wait (%p4499_p9), [#allocation9], 3072  }
  0xfc   : > { %3729 = vsyncadd (%p4500_p8), [#allocation9], 4294964224  ;;  %p4501_p3 = pmov %p4498_p1 }
  0xfd   : > { %p4502_p12 = pmov %p4498_p1 }
  0xfe   : > { %3731 = dma.done.wait (%p4501_p3), [#allocation12], 8192  }
  0xff   : > { %3733 = vsyncadd (%p4502_p12), [#allocation12], 4294959104  ;;  %v611_v0 = vld [vmem:[%s539_s26] sm:$0xff]  ;;  %v610_v1 = vld [vmem:[%s530_s13] sm:$0xff]  ;;  %v3775_v5 = vmov 0.0   ;;  %v3776_v29 = vmov 0  }
 0x100   : > { %640 = vadd.xlane.f32.xlu0 %v611_v0  ;;  %v3319_v2 = vld [vmem:[#allocation8 + $0x4] ss:$8 sps:$4 sm:$0xff]   ;;  %v3321_v3 = vld [vmem:[#allocation8] ss:$8 sps:$4 sm:$0xff]   ;;  %3099 = vmatprep.subr.bf16.mxu0 %v3775_v5  ;;  %v3322_v6 = vld [vmem:[#allocation8 + $0x14] ss:$8 sps:$4 sm:$0xff]  }
 0x101   : > { %v3324_v4 = vld [vmem:[#allocation7] sm:$0xff]   ;;  %v3325_v7 = vld [vmem:[#allocation8 + $0x10] ss:$8 sps:$4 sm:$0xff]   ;;  %855 = vmatprep.subr.bf16.mxu1 %v3319_v2  ;;  %v3328_v17 = vld [vmem:[#allocation7 + $0x8] sm:$0xff]   ;;  %887 = vmatprep.mubr.bf16.mxu1 %v3776_v29  ;;  %vm3777_vm0 = vmmov 0   ;;  %s4503_s16 = sld [smem:[#allocation22_spill]] }
 0x102   : > { %3100 = vmatpush3.bf16.msra.mxu0 %v3324_v4  ;;  %v3326_v8 = vld [vmem:[#allocation8 + $0x24] ss:$8 sps:$4 sm:$0xff]   ;;  %856 = vmatpush1.bf16.msra.mxu1 %v3321_v3  ;;  %v3329_v18 = vld [vmem:[#allocation8 + $0x20] ss:$8 sps:$4 sm:$0xff]   ;;  %v3330_v19 = vld [vmem:[#allocation8 + $0x34] ss:$8 sps:$4 sm:$0xff]  }
 0x103   : > { %3101 = vmatprep.subr.bf16.mxu0 %v3775_v5  ;;  %857 = vmatprep.subr.bf16.mxu1 %v3322_v6  ;;  %v3332_v20 = vld [vmem:[#allocation7 + $0x10] sm:$0xff]   ;;  %v3334_v22 = vld [vmem:[#allocation8 + $0x44] ss:$8 sps:$4 sm:$0xff]   ;;  %v3336_v23 = vld [vmem:[#allocation7 + $0x18] sm:$0xff]   ;;  %s3778_s11 = smov 96   ;;  %s3779_s28 = smov 64  }
 0x104   : > { %614 = vadd.xlane.f32.xlu0 %v610_v1  ;;  %v3333_v21 = vld [vmem:[#allocation8 + $0x30] ss:$8 sps:$4 sm:$0xff]   ;;  %v3337_v24 = vld [vmem:[#allocation8 + $0x40] ss:$8 sps:$4 sm:$0xff]   ;;  %v3338_v25 = vld [vmem:[#allocation8 + $0x54] ss:$8 sps:$4 sm:$0xff]   ;;  %3115 = vmatprep.mubr.msk.bf16.mxu0 %vm3777_vm0, %v3775_v5 }
 0x105   : > { %v3340_v26 = vld [vmem:[#allocation7 + $0x20] sm:$0xff]   ;;  %v3341_v27 = vld [vmem:[#allocation8 + $0x50] ss:$8 sps:$4 sm:$0xff]   ;;  %v3344_v30 = vld [vmem:[#allocation7 + $0x28] sm:$0xff]   ;;  %s3780_s12 = smov 32   ;;  %vm1346_vm1 = vcmask 261120  }
 0x106   : > { %858 = vmatpush1.bf16.msra.mxu1 %v3325_v7  ;;  %3102 = vmatpush3.bf16.msra.mxu0 %v3328_v17  ;;  %v3342_v28 = vld [vmem:[#allocation8 + $0x64] ss:$8 sps:$4 sm:$0xff]   ;;  %v3345_v31 = vld [vmem:[#allocation8 + $0x60] ss:$8 sps:$4 sm:$0xff]   ;;  %v3346_v32 = vld [vmem:[#allocation8 + $0x74] ss:$8 sps:$4 sm:$0xff]  }
 0x107   : > { %859 = vmatprep.subr.bf16.mxu1 %v3326_v8  ;;  %3103 = vmatprep.subr.bf16.mxu0 %v3775_v5  ;;  %v3348_v33 = vld [vmem:[#allocation7 + $0x30] sm:$0xff]   ;;  %v3350_v35 = vld [vmem:[#allocation7 + $0x38] sm:$0xff]   ;;  %v2899_v43 = vld [vmem:[%s4444_s2] ss:$0 sm:$0xff]  ;;  %v3781_v62 = vmov 1983009808  }
 0x108   : > { %v3349_v34 = vld [vmem:[#allocation8 + $0x70] ss:$8 sps:$4 sm:$0xff]   ;;  %v2900_v45 = vld [vmem:[%s4503_s16] ss:$0 sm:$0xff]  ;;  %v909_v63 = vunpack.c.l.s4 %v3781_v62  ;;  %vm1535_vm2 = vcmask 64512   ;;  %vm1587_vm3 = vcmask 1043456  }
 0x109   : > { %vm1918_vm4 = vcmask 523264   ;;  %vm1920_vm5 = vcmask 785408   ;;  %s4504_s8 = sld [smem:[#allocation26_spill]]  ;;  %s4506_s26 = sld [smem:[#allocation28_spill]] }
 0x10a   : > { %860 = vmatpush1.bf16.msra.mxu1 %v3329_v18  ;;  %3104 = vmatpush3.bf16.msra.mxu0 %v3332_v20  ;;  %v910_v3 = vunpack.c.0.s8 %v909_v63  ;;  %s4507_s10 = sld [smem:[#allocation30_spill]]  ;;  %s4508_s3 = sld [smem:[#allocation21_spill]] }
 0x10b   : > { %861 = vmatprep.subr.bf16.mxu1 %v3330_v19  ;;  %3105 = vmatprep.subr.bf16.mxu0 %v3775_v5  ;;  %s608_s7 = scalar_lea.vmem [#allocation14], %s4139_s6  ;;  %s4510_s22 = sld [smem:[#allocation33_spill]] }
 0x10c   : > { %s2727_s14 = sshll.u32 %s608_s7, 4  ;;  %s2713_s20 = scalar_lea.sflag [#allocation4], %s4136_s24  ;;  %s4395_s14 = int_to_ptr.vmem [resolvable:$true] %s2727_s14 }
 0x10d   : > { %s3662_s25 = scalar_lea.vmem %s4395_s14, 128  ;;  %p4511_p0 = scmp.ne.s32.totalorder %s4492_s9, 0 }
 0x10e   : > { %862 = vmatpush1.bf16.msra.mxu1 %v3333_v21  ;;  %3106 = vmatpush3.bf16.msra.mxu0 %v3336_v23  ;;  %p3663_p13 = scmp.ne.s32.totalorder %s4395_s14, %s3662_s25  ;;  %s3783_s6 = smov [#allocation14]  }
 0x10f   : > { %863 = vmatprep.subr.bf16.mxu1 %v3334_v22  ;;  %3107 = vmatprep.subr.bf16.mxu0 %v3775_v5 }
 0x110   : > { %p3664_p7 = pnand %p3663_p13, %p4511_p0 }
 0x112   : > { %864 = vmatpush1.bf16.msra.mxu1 %v3337_v24  ;;  %3108 = vmatpush3.bf16.msra.mxu0 %v3340_v26  ;;  %p3665_p5 = pneg %p3664_p7 }
 0x113   : > { %865 = vmatprep.subr.bf16.mxu1 %v3338_v25  ;;  %3109 = vmatprep.subr.bf16.mxu0 %v3775_v5 }
 0x116   : > { %866 = vmatpush1.bf16.msra.mxu1 %v3341_v27  ;;  %3110 = vmatpush3.bf16.msra.mxu0 %v3344_v30 }
 0x117   : > { %867 = vmatprep.subr.bf16.mxu1 %v3342_v28  ;;  %3111 = vmatprep.subr.bf16.mxu0 %v3775_v5 }
 0x11a   : > { %868 = vmatpush1.bf16.msra.mxu1 %v3345_v31  ;;  %3112 = vmatpush3.bf16.msra.mxu0 %v3348_v33 }
 0x11b   : > { %869 = vmatprep.subr.bf16.mxu1 %v3346_v32  ;;  %3113 = vmatprep.subr.bf16.mxu0 %v3775_v5 }
 0x11e   : > { %870 = vmatpush1.bf16.msra.mxu1 %v3349_v34  ;;  %3114 = vmatpush3.bf16.msra.mxu0 %v3350_v35 }
 0x11f   : > { %3119 = vmatprep.subr.bf16.mxu1 %v3775_v5  ;;  %3143 = vmatprep.subr.bf16.mxu0 %v3775_v5 }
 0x18d   : > { %v641_v9 = vpop.xlane.xlu0 %640 }
 0x18e   : > { %v642_v10 = vmul.f32 0.0078125, %v641_v9 }
 0x190   : > { %v4169_v11 = vsub.f32 %v611_v0, %v642_v10  ;;  %v911_v0 = vlaneseq }
 0x191   : > { %v615_v12 = vpop.xlane.xlu0 %614 }
 0x192   : > { %v617_v13 = vmul.f32 0.0078125, %v615_v12  ;;  %v644_v14 = vmul.f32 %v4169_v11, %v4169_v11  ;;  %v4208_v4 = vshrl.u32 %v911_v0, 7 }
 0x194   : > { %v4173_v15 = vsub.f32 %v610_v1, %v617_v13  ;;  %645 = vadd.xlane.f32.xlu1 %v644_v14  ;;  %v3782_v1 = vmov 1934713408   ;;  %v4211_v8 = vsub.s32 %v910_v3, %v4208_v4 }
 0x195   : > { %v941_v2 = vunpack.c.l.s4 %v3782_v1 }
 0x196   : > { %v619_v16 = vmul.f32 %v4173_v15, %v4173_v15 }
 0x197   : > { %v942_v7 = vunpack.c.0.s8 %v941_v2 }
 0x198   : > { %620 = vadd.xlane.f32.xlu1 %v619_v16 }
 0x221   : > { %v646_v36 = vpop.xlane.xlu1 %645 }
 0x222   : > { %v647_v37 = vmul.f32 0.0078125, %v646_v36 }
 0x224   : > { %v648_v38 = vadd.f32 1e-05, %v647_v37 }
 0x225   : > { %v621_v39 = vpop.xlane.xlu1 %620 }
 0x226   : > { %3439 = vrsqrt.f32 %v648_v38  ;;  %v622_v40 = vmul.f32 0.0078125, %v621_v39 }
 0x228   : > { %v623_v41 = vadd.f32 1e-05, %v622_v40 }
 0x22a   : > { %3441 = vrsqrt.f32 %v623_v41 }
 0x230   : > { %v3440_v42 = vpop.eup %3439 }
 0x231   : > { %v650_v44 = vmul.f32 %v3440_v42, %v4169_v11 }
 0x233   : > { %v651_v46 = vmul.f32 %v2899_v43, %v650_v44 }
 0x234   : > { %v3442_v47 = vpop.eup %3441 }
 0x235   : > { %v652_v48 = vadd.f32 %v2900_v45, %v651_v46  ;;  %v625_v49 = vmul.f32 %v3442_v47, %v4173_v15  ;;  %v4214_v15 = vsub.s32 %v942_v7, %v4208_v4 }
 0x237   : > { %v758_v50 = vpack.c.bf16 %v652_v48, %v652_v48  ;;  %v632_v51 = vmul.f32 %v2899_v43, %v625_v49 }
 0x239   : > { %888 = vmatmul.mubr.bf16.vlgmr.msra.gmra.mrb[0].mxu1 %v758_v50  ;;  %v639_v52 = vadd.f32 %v2900_v45, %v632_v51 }
 0x23a   : > { %3121 = vmatprep.mubr.msk.bf16.mxu1 %vm3777_vm0, %v3775_v5 }
 0x23b   : > { %v653_v53 = vpack.c.bf16 %v639_v52, %v639_v52 }
 0x23d   : > { %3116 = vmatmul.mubr.bf16.vlgmr.msra.gmra.mrb[0].mxu0 %v653_v53 }
 0x23e   : > { %3145 = vmatprep.mubr.msk.bf16.mxu0 %vm3777_vm0, %v3775_v5 }
 0x30c   : > { %v889_v54 = vpop.f32.mrb[0].mxu1 }
 0x30d   : > { %v4200_v55 = vpop.f32.mrb[1].mxu1  ;;  %1047 = vrot.lane.b32.xlu0 %v889_v54, %s3778_s11  ;;  %1050 = vrot.lane.b32.xlu1 %v889_v54, %s3779_s28 }
 0x30e   : > { %v893_v56 = vpop.f32.mrb[2].mxu1 }
 0x30f   : > { %v894_v57 = vpop.f32.mrb[3].mxu1 }
 0x310   : > { %v752_v58 = vpop.f32.mrb[0].mxu0 }
 0x311   : > { %1053 = vrot.lane.b32.xlu1 %v889_v54, %s3780_s12  ;;  %900 = vrot.lane.b32.xlu0 %v752_v58, %s3779_s28  ;;  %v3117_v59 = vpop.f32.mrb[1].mxu0 }
 0x312   : > { %v755_v60 = vpop.f32.mrb[2].mxu0 }
 0x313   : > { %v3118_v61 = vpop.f32.mrb[3].mxu0 }
 0x315   : > { %897 = vrot.lane.b32.xlu1 %v752_v58, %s3778_s11 }
 0x319   : > { %903 = vrot.lane.b32.xlu1 %v752_v58, %s3780_s12 }
 0x37f   : > { %v1051_v6 = vpop.permute.xlu1 %1050  ;;  %v1048_v11 = vpop.permute.xlu0 %1047 }
 0x380   : > { %v1056_v9 = vcombine.low %v889_v54, %v1051_v6  ;;  %v1057_v10 = vcombine.high %v889_v54, %v1051_v6 }
 0x382   : > { %v1064_v16 = vrot.slane %v1056_v9, %v4211_v8  ;;  %v1071_v17 = vrot.slane %v1057_v10, %v4211_v8 }
 0x383   : > { %v1054_v12 = vpop.permute.xlu1 %1053  ;;  %v901_v25 = vpop.permute.xlu0 %900 }
 0x384   : > { %v1072_v13 = vcombine.low %v1048_v11, %v1054_v12  ;;  %v1073_v14 = vcombine.high %v1048_v11, %v1054_v12  ;;  %v906_v31 = vcombine.low %v752_v58, %v901_v25  ;;  %v907_v32 = vcombine.high %v752_v58, %v901_v25 }
 0x386   : > { %v1080_v18 = vrot.slane %v1072_v13, %v4211_v8  ;;  %v1087_v19 = vrot.slane %v1073_v14, %v4211_v8  ;;  %v914_v44 = vrot.slane %v906_v31, %v4211_v8  ;;  %v921_v45 = vrot.slane %v907_v32, %v4211_v8 }
 0x387   : > { %v898_v20 = vpop.permute.xlu1 %897 }
 0x388   : > { %v1088_v21 = vcombine.low %v1064_v16, %v1080_v18  ;;  %v1089_v22 = vcombine.high %v1064_v16, %v1080_v18  ;;  %v1104_v23 = vcombine.low %v1071_v17, %v1087_v19  ;;  %v1105_v24 = vcombine.high %v1071_v17, %v1087_v19 }
 0x38a   : > { %v1096_v26 = vrot.slane %v1088_v21, %v4214_v15  ;;  %v1103_v27 = vrot.slane %v1089_v22, %v4214_v15  ;;  %v1112_v28 = vrot.slane %v1104_v23, %v4214_v15  ;;  %v1119_v30 = vrot.slane %v1105_v24, %v4214_v15 }
 0x38b   : > { %v904_v33 = vpop.permute.xlu1 %903 }
 0x38c   : > { %v1124_v34 = vcombine.low %v1096_v26, %v1103_v27  ;;  %v2927_v35 = vcombine.high %v1096_v26, %v1103_v27  ;;  %v1140_v36 = vcombine.low %v1112_v28, %v1119_v30  ;;  %v2928_v37 = vcombine.high %v1112_v28, %v1119_v30 }
 0x38d   : > { %v922_v38 = vcombine.low %v898_v20, %v904_v33  ;;  %v923_v39 = vcombine.high %v898_v20, %v904_v33 }
 0x38e   : > { %v1131_v40 = vrot.slane %v1124_v34, %v4211_v8  ;;  %v1139_v41 = vrot.slane %v2927_v35, %v4211_v8  ;;  %v1147_v42 = vrot.slane %v1140_v36, %v4211_v8  ;;  %v1155_v43 = vrot.slane %v2928_v37, %v4211_v8 }
 0x38f   : > { %v930_v46 = vrot.slane %v922_v38, %v4211_v8  ;;  %v937_v47 = vrot.slane %v923_v39, %v4211_v8 }
 0x390   : > { %v1156_v48 = vcombine.low %v1131_v40, %v1139_v41  ;;  %v1172_v49 = vcombine.low %v1147_v42, %v1155_v43  ;;  %v1157_v11 = vcombine.high %v1131_v40, %v1139_v41  ;;  %v1173_v16 = vcombine.high %v1147_v42, %v1155_v43 }
 0x391   : > { %v938_v50 = vcombine.low %v914_v44, %v930_v46  ;;  %v939_v51 = vcombine.high %v914_v44, %v930_v46  ;;  %v954_v52 = vcombine.low %v921_v45, %v937_v47  ;;  %v955_v53 = vcombine.high %v921_v45, %v937_v47 }
 0x392   : > { %v1164_v54 = vrot.slane %v1156_v48, %v4214_v15  ;;  %v1180_v56 = vrot.slane %v1172_v49, %v4214_v15  ;;  %v1171_v21 = vrot.slane %v1157_v11, %v4214_v15  ;;  %v1187_v22 = vrot.slane %v1173_v16, %v4214_v15 }
 0x393   : > { %v946_v57 = vrot.slane %v938_v50, %v4214_v15  ;;  %v953_v58 = vrot.slane %v939_v51, %v4214_v15  ;;  %v962_v59 = vrot.slane %v954_v52, %v4214_v15  ;;  %v969_v60 = vrot.slane %v955_v53, %v4214_v15 }
 0x394   : > { %v1188_v61 = vcombine.low %v1164_v54, %v1180_v56  ;;  %v1189_v14 = vcombine.high %v1164_v54, %v1180_v56  ;;  %v1190_v25 = vcombine.low %v1171_v21, %v1187_v22  ;;  %v1191_v35 = vcombine.high %v1171_v21, %v1187_v22 }
 0x395   : > { %v974_v62 = vcombine.low %v946_v57, %v953_v58  ;;  %v2925_v63 = vcombine.high %v946_v57, %v953_v58  ;;  %v990_v0 = vcombine.low %v962_v59, %v969_v60  ;;  %v2926_v1 = vcombine.high %v962_v59, %v969_v60 }
 0x396   : > { %v1192_v2 = vpack.c.bf16 %v1188_v61, %v1188_v61  ;;  %v1193_v20 = vpack.c.bf16 %v1189_v14, %v1189_v14  ;;  %v1194_v30 = vpack.c.bf16 %v1190_v25, %v1190_v25  ;;  %v1195_v37 = vpack.c.bf16 %v1191_v35, %v1191_v35 }
 0x397   : > { %v981_v3 = vrot.slane %v974_v62, %v4211_v8  ;;  %v989_v6 = vrot.slane %v2925_v63, %v4211_v8  ;;  %v997_v7 = vrot.slane %v990_v0, %v4211_v8  ;;  %v1005_v9 = vrot.slane %v2926_v1, %v4211_v8 }
 0x398   : > { %v1351_v10 = vsel %vm1346_vm1, %v1192_v2, 0  ;;  %v1397_v24 = vsel %vm1346_vm1, %v1193_v20, 0  ;;  %v1443_v34 = vsel %vm1346_vm1, %v1194_v30, 0  ;;  %v1489_v39 = vsel %vm1346_vm1, %v1195_v37, 0 }
 0x399   : > { %v1006_v12 = vcombine.low %v981_v3, %v989_v6  ;;  %v1022_v13 = vcombine.low %v997_v7, %v1005_v9  ;;  %3120 = vmatpush3.bf16.xpose.msra.mxu1 %v1351_v10  ;;  %v1007_v26 = vcombine.high %v981_v3, %v989_v6  ;;  %v1023_v27 = vcombine.high %v997_v7, %v1005_v9 }
 0x39a   : > { %3125 = vmatprep.subr.bf16.mxu1 %v3775_v5 }
 0x39b   : > { %v1014_v17 = vrot.slane %v1006_v12, %v4214_v15  ;;  %v1030_v18 = vrot.slane %v1022_v13, %v4214_v15  ;;  %v1021_v32 = vrot.slane %v1007_v26, %v4214_v15  ;;  %v1037_v33 = vrot.slane %v1023_v27, %v4214_v15 }
 0x39d   : > { %v1038_v19 = vcombine.low %v1014_v17, %v1030_v18  ;;  %v1039_v28 = vcombine.high %v1014_v17, %v1030_v18  ;;  %v1040_v36 = vcombine.low %v1021_v32, %v1037_v33  ;;  %v1041_v40 = vcombine.high %v1021_v32, %v1037_v33 }
 0x39f   : > { %v1042_v23 = vpack.c.bf16 %v1038_v19, %v1038_v19  ;;  %v1043_v31 = vpack.c.bf16 %v1039_v28, %v1039_v28  ;;  %v1044_v38 = vpack.c.bf16 %v1040_v36, %v1040_v36  ;;  %v1045_v41 = vpack.c.bf16 %v1041_v40, %v1041_v40 }
 0x3a1   : > { %3122 = vmatmul.mubr.msk.bf16.vlgmr.msra.gmra.mrb[4].mxu1 %vm1346_vm1, %v1042_v23 }
 0x3a2   : > { %3126 = vmatpush3.bf16.xpose.msra.mxu1 %v1397_v24  ;;  %3127 = vmatprep.mubr.msk.bf16.mxu1 %vm3777_vm0, %v3775_v5 }
 0x3a3   : > { %3131 = vmatprep.subr.bf16.mxu1 %v3775_v5 }
 0x3a9   : > { %3128 = vmatmul.mubr.msk.bf16.vlgmr.msra.gmra.mrb[8].mxu1 %vm1346_vm1, %v1043_v31 }
 0x3aa   : > { %3132 = vmatpush3.bf16.xpose.msra.mxu1 %v1443_v34  ;;  %3133 = vmatprep.mubr.msk.bf16.mxu1 %vm3777_vm0, %v3775_v5 }
 0x3ab   : > { %3137 = vmatprep.subr.bf16.mxu1 %v3775_v5 }
 0x3b1   : > { %3134 = vmatmul.mubr.msk.bf16.vlgmr.msra.gmra.mrb[12].mxu1 %vm1346_vm1, %v1044_v38 }
 0x3b2   : > { %3138 = vmatpush3.bf16.xpose.msra.mxu1 %v1489_v39  ;;  %3139 = vmatprep.mubr.msk.bf16.mxu1 %vm3777_vm0, %v3775_v5 }
 0x3b3   : > { %3149 = vmatprep.subr.bf16.mxu1 %v3775_v5 }
 0x3b9   : > { %3140 = vmatmul.mubr.msk.bf16.vlgmr.msra.gmra.mrb[16].mxu1 %vm1346_vm1, %v1045_v41 }
 0x3ba   : > { %3151 = vmatprep.mubr.msk.bf16.mxu1 %vm3777_vm0, %v3775_v5 }
 0x474   : > { %v1387_v42 = vpop.f32.mrb[4].mxu1 }
 0x475   : > { %v1531_v43 = vmul.f32 0.17677669, %v1387_v42  ;;  %v3123_v44 = vpop.f32.mrb[5].mxu1 }
 0x476   : > { %v1390_v45 = vpop.f32.mrb[6].mxu1 }
 0x477   : > { %v3124_v46 = vpop.f32.mrb[7].mxu1  ;;  %v1536_v47 = vsel %vm1535_vm2, %v1531_v43, -inf }
 0x478   : > { %1537 = vmax.xlane.f32.xlu0 %v1536_v47 }
 0x47c   : > { %v1433_v48 = vpop.f32.mrb[8].mxu1 }
 0x47d   : > { %v1532_v49 = vmul.f32 0.17677669, %v1433_v48  ;;  %v3129_v50 = vpop.f32.mrb[9].mxu1 }
 0x47e   : > { %v1436_v51 = vpop.f32.mrb[10].mxu1 }
 0x47f   : > { %v3130_v52 = vpop.f32.mrb[11].mxu1  ;;  %v1539_v53 = vsel %vm1535_vm2, %v1532_v49, -inf }
 0x480   : > { %1540 = vmax.xlane.f32.xlu1 %v1539_v53 }
 0x484   : > { %v1479_v54 = vpop.f32.mrb[12].mxu1 }
 0x485   : > { %v1533_v56 = vmul.f32 0.17677669, %v1479_v54  ;;  %v3135_v57 = vpop.f32.mrb[13].mxu1 }
 0x486   : > { %v1482_v58 = vpop.f32.mrb[14].mxu1 }
 0x487   : > { %v3136_v59 = vpop.f32.mrb[15].mxu1  ;;  %v1542_v60 = vsel %vm1535_vm2, %v1533_v56, -inf }
 0x488   : > { %1543 = vmax.xlane.f32.xlu0 %v1542_v60 }
 0x48c   : > { %v1525_v61 = vpop.f32.mrb[16].mxu1 }
 0x48d   : > { %v1534_v62 = vmul.f32 0.17677669, %v1525_v61  ;;  %v3141_v63 = vpop.f32.mrb[17].mxu1 }
 0x48e   : > { %v1528_v0 = vpop.f32.mrb[18].mxu1 }
 0x48f   : > { %v3142_v1 = vpop.f32.mrb[19].mxu1  ;;  %v1545_v2 = vsel %vm1535_vm2, %v1534_v62, -inf }
 0x490   : > { %1546 = vmax.xlane.f32.xlu0 %v1545_v2 }
 0x491   : > { %1200 = vrot.lane.b32.xlu1 %v4200_v55, %s3779_s28 }
 0x505   : > { %v1538_v3 = vpop.xlane.xlu0 %1537 }
 0x506   : > { %v1548_v6 = vsub.f32 %v1531_v43, %v1538_v3 }
 0x508   : > { %v1552_v7 = vmul.f32 1.442695, %v1548_v6 }
 0x50a   : > { %3443 = vpow2.f32 %v1552_v7 }
 0x50d   : > { %v1541_v9 = vpop.xlane.xlu1 %1540 }
 0x50e   : > { %v1549_v10 = vsub.f32 %v1532_v49, %v1541_v9 }
 0x510   : > { %v1554_v11 = vmul.f32 1.442695, %v1549_v10 }
 0x511   : > { %v1201_v27 = vpop.permute.xlu1 %1200 }
 0x512   : > { %3445 = vpow2.f32 %v1554_v11  ;;  %v1206_v31 = vcombine.low %v4200_v55, %v1201_v27  ;;  %v1207_v32 = vcombine.high %v4200_v55, %v1201_v27 }
 0x514   : > { %v4274_v12 = vpop.eup %3443  ;;  %v1214_v37 = vrot.slane %v1206_v31, %v4211_v8  ;;  %v1221_v38 = vrot.slane %v1207_v32, %v4211_v8 }
 0x515   : > { %v1560_v13 = vsel %vm1535_vm2, %v4274_v12, 0.0  ;;  %v1544_v17 = vpop.xlane.xlu0 %1543 }
 0x516   : > { %1561 = vadd.xlane.f32.xlu0 %v1560_v13  ;;  %v1550_v21 = vsub.f32 %v1533_v56, %v1544_v17 }
 0x518   : > { %v1556_v22 = vmul.f32 1.442695, %v1550_v21 }
 0x51c   : > { %v4278_v14 = vpop.eup %3445 }
 0x51d   : > { %v1563_v16 = vsel %vm1535_vm2, %v4278_v14, 0.0  ;;  %v1547_v18 = vpop.xlane.xlu0 %1546 }
 0x51e   : > { %1564 = vadd.xlane.f32.xlu1 %v1563_v16  ;;  %v1551_v19 = vsub.f32 %v1534_v62, %v1547_v18 }
 0x520   : > { %v1558_v20 = vmul.f32 1.442695, %v1551_v19 }
 0x522   : > { %3447 = vpow2.f32 %v1558_v20 }
 0x523   : > { %3449 = vpow2.f32 %v1556_v22 }
 0x52c   : > { %1197 = vrot.lane.b32.xlu0 %v4200_v55, %s3778_s11  ;;  %v4286_v23 = vpop.eup %3447 }
 0x52d   : > { %v1569_v24 = vsel %vm1535_vm2, %v4286_v23, 0.0  ;;  %v4290_v25 = vpop.eup %3449 }
 0x52e   : > { %v1566_v26 = vsel %vm1535_vm2, %v4290_v25, 0.0 }
 0x52f   : > { %1203 = vrot.lane.b32.xlu1 %v4200_v55, %s3780_s12 }
 0x54b   : > { %1570 = vadd.xlane.f32.xlu0 %v1569_v24 }
 0x553   : > { %1567 = vadd.xlane.f32.xlu1 %v1566_v26 }
 0x5a3   : > { %v1562_v28 = vpop.xlane.xlu0 %1561 }
 0x5a4   : > { %3451 = vrcp.f32 %v1562_v28 }
 0x5a7   : > { %v1198_v33 = vpop.permute.xlu0 %1197 }
 0x5ab   : > { %v1565_v30 = vpop.xlane.xlu1 %1564 }
 0x5ac   : > { %3453 = vrcp.f32 %v1565_v30 }
 0x5ae   : > { %v3452_v61 = vpop.eup %3451 }
 0x5af   : > { %v1204_v34 = vpop.permute.xlu1 %1203  ;;  %v1576_v10 = vmul.f32 %v3452_v61, %v4274_v12 }
 0x5b0   : > { %v1222_v35 = vcombine.low %v1198_v33, %v1204_v34  ;;  %v1223_v36 = vcombine.high %v1198_v33, %v1204_v34  ;;  %v3351_v34 = vld [vmem:[#allocation10] sm:$0xff]  }
 0x5b1   : > { %v1580_v21 = vpack.c.bf16 %v1576_v10, %v1576_v10  ;;  %v3358_v10 = vld [vmem:[#allocation10 + $0x38] sm:$0xff]  }
 0x5b2   : > { %v1230_v39 = vrot.slane %v1222_v35, %v4211_v8  ;;  %v1237_v40 = vrot.slane %v1223_v36, %v4211_v8  ;;  %v3352_v35 = vld [vmem:[#allocation10 + $0x8] sm:$0xff]   ;;  %v3354_v36 = vld [vmem:[#allocation10 + $0x18] sm:$0xff]  }
 0x5b4   : > { %v1238_v41 = vcombine.low %v1214_v37, %v1230_v39  ;;  %v1239_v42 = vcombine.high %v1214_v37, %v1230_v39  ;;  %v1254_v43 = vcombine.low %v1221_v38, %v1237_v40  ;;  %v1255_v44 = vcombine.high %v1221_v38, %v1237_v40  ;;  %v3356_v37 = vld [vmem:[#allocation10 + $0x28] sm:$0xff]  }
 0x5b6   : > { %v1246_v55 = vrot.slane %v1238_v41, %v4214_v15  ;;  %v1253_v45 = vrot.slane %v1239_v42, %v4214_v15  ;;  %v1262_v46 = vrot.slane %v1254_v43, %v4214_v15  ;;  %v1269_v47 = vrot.slane %v1255_v44, %v4214_v15  ;;  %v3454_v2 = vpop.eup %3453 }
 0x5b7   : > { %v1577_v11 = vmul.f32 %v3454_v2, %v4278_v14 }
 0x5b8   : > { %v1274_v48 = vcombine.low %v1246_v55, %v1253_v45  ;;  %v2929_v49 = vcombine.high %v1246_v55, %v1253_v45  ;;  %v1290_v50 = vcombine.low %v1262_v46, %v1269_v47  ;;  %v2930_v51 = vcombine.high %v1262_v46, %v1269_v47 }
 0x5b9   : > { %v1581_v22 = vpack.c.bf16 %v1577_v11, %v1577_v11 }
 0x5ba   : > { %v1281_v52 = vrot.slane %v1274_v48, %v4211_v8  ;;  %v1289_v53 = vrot.slane %v2929_v49, %v4211_v8  ;;  %v1297_v54 = vrot.slane %v1290_v50, %v4211_v8  ;;  %v1305_v56 = vrot.slane %v2930_v51, %v4211_v8 }
 0x5bc   : > { %v1306_v57 = vcombine.low %v1281_v52, %v1289_v53  ;;  %v1322_v58 = vcombine.low %v1297_v54, %v1305_v56  ;;  %v1307_v59 = vcombine.high %v1281_v52, %v1289_v53  ;;  %v1323_v60 = vcombine.high %v1297_v54, %v1305_v56 }
 0x5be   : > { %v1314_v62 = vrot.slane %v1306_v57, %v4214_v15  ;;  %v1330_v63 = vrot.slane %v1322_v58, %v4214_v15  ;;  %v1321_v0 = vrot.slane %v1307_v59, %v4214_v15  ;;  %v1337_v1 = vrot.slane %v1323_v60, %v4214_v15 }
 0x5c0   : > { %v1338_v3 = vcombine.low %v1314_v62, %v1330_v63  ;;  %v1339_v6 = vcombine.high %v1314_v62, %v1330_v63  ;;  %v1340_v7 = vcombine.low %v1321_v0, %v1337_v1  ;;  %v1341_v9 = vcombine.high %v1321_v0, %v1337_v1  ;;  %v3357_v62 = vld [vmem:[#allocation10 + $0x30] sm:$0xff]  }
 0x5c2   : > { %v1342_v13 = vpack.c.bf16 %v1338_v3, %v1338_v3  ;;  %v1343_v16 = vpack.c.bf16 %v1339_v6, %v1339_v6  ;;  %v1344_v19 = vpack.c.bf16 %v1340_v7, %v1340_v7  ;;  %v1345_v20 = vpack.c.bf16 %v1341_v9, %v1341_v9 }
 0x5c4   : > { %v1589_v17 = vsel %vm1587_vm3, %v1342_v13, 0  ;;  %v1635_v18 = vsel %vm1587_vm3, %v1343_v16, 0  ;;  %v1681_v12 = vsel %vm1587_vm3, %v1344_v19, 0  ;;  %v1727_v14 = vsel %vm1587_vm3, %v1345_v20, 0 }
 0x5c5   : > { %3144 = vmatpush3.bf16.msra.mxu0 %v1589_v17  ;;  %3150 = vmatpush3.bf16.msra.mxu1 %v1635_v18 }
 0x5c6   : > { %3155 = vmatprep.subr.bf16.mxu0 %v3775_v5  ;;  %3161 = vmatprep.subr.bf16.mxu1 %v3775_v5 }
 0x5c8   : > { %3146 = vmatmul.mubr.msk.bf16.vlgmr.msra.gmra.mrb[4].mxu0 %vm1535_vm2, %v1580_v21  ;;  %3152 = vmatmul.mubr.msk.bf16.vlgmr.msra.gmra.mrb[20].mxu1 %vm1535_vm2, %v1581_v22 }
 0x5c9   : > { %3156 = vmatpush3.bf16.msra.mxu0 %v1681_v12  ;;  %3162 = vmatpush3.bf16.msra.mxu1 %v1727_v14 }
 0x5ca   : > { %3163 = vmatprep.mubr.msk.bf16.mxu1 %vm3777_vm0, %v3775_v5  ;;  %3157 = vmatprep.mubr.msk.bf16.mxu0 %vm3777_vm0, %v3775_v5 }
 0x5cb   : > { %3167 = vmatprep.subr.bf16.mxu0 %v3775_v5 }
 0x5d8   : > { %v1571_v24 = vpop.xlane.xlu0 %1570 }
 0x5d9   : > { %3455 = vrcp.f32 %v1571_v24 }
 0x5e0   : > { %v1568_v26 = vpop.xlane.xlu1 %1567 }
 0x5e1   : > { %3457 = vrcp.f32 %v1568_v26 }
 0x5e3   : > { %v3456_v27 = vpop.eup %3455 }
 0x5e4   : > { %v1579_v28 = vmul.f32 %v3456_v27, %v4286_v23  ;;  %v3353_v23 = vld [vmem:[#allocation10 + $0x10] sm:$0xff]  }
 0x5e6   : > { %v1583_v30 = vpack.c.bf16 %v1579_v28, %v1579_v28 }
 0x5e8   : > { %3164 = vmatmul.mubr.msk.bf16.vlgmr.msra.gmra.mrb[24].mxu1 %vm1535_vm2, %v1583_v30 }
 0x5e9   : > { %2309 = vmatprep.mubr.bf16.mxu1 %v3776_v29 }
 0x5eb   : > { %v3458_v31 = vpop.eup %3457 }
 0x5ec   : > { %v1578_v32 = vmul.f32 %v3458_v31, %v4290_v25  ;;  %v3355_v25 = vld [vmem:[#allocation10 + $0x20] sm:$0xff]  }
 0x5ee   : > { %v1582_v33 = vpack.c.bf16 %v1578_v32, %v1578_v32 }
 0x5f0   : > { %3158 = vmatmul.mubr.msk.bf16.vlgmr.msra.gmra.mrb[8].mxu0 %vm1535_vm2, %v1582_v33 }
 0x5f1   : > { %3183 = vmatprep.mubr.msk.bf16.mxu0 %vm3777_vm0, %v3775_v5  ;;  %3168 = vmatpush3.bf16.msra.mxu0 %v3351_v34 }
 0x5f2   : > { %3169 = vmatprep.subr.bf16.mxu0 %v3775_v5 }
 0x5f5   : > { %3170 = vmatpush3.bf16.msra.mxu0 %v3352_v35 }
 0x5f6   : > { %3171 = vmatprep.subr.bf16.mxu0 %v3775_v5 }
 0x5f9   : > { %3172 = vmatpush3.bf16.msra.mxu0 %v3353_v23 }
 0x5fa   : > { %3173 = vmatprep.subr.bf16.mxu0 %v3775_v5 }
 0x5fd   : > { %3174 = vmatpush3.bf16.msra.mxu0 %v3354_v36 }
 0x5fe   : > { %3175 = vmatprep.subr.bf16.mxu0 %v3775_v5 }
 0x601   : > { %3176 = vmatpush3.bf16.msra.mxu0 %v3355_v25 }
 0x602   : > { %3177 = vmatprep.subr.bf16.mxu0 %v3775_v5 }
 0x605   : > { %3178 = vmatpush3.bf16.msra.mxu0 %v3356_v37  ;;  %v2941_v37 = vld [vmem:[%s4504_s8] ss:$0 sm:$0xff] }
 0x606   : > { %3179 = vmatprep.subr.bf16.mxu0 %v3775_v5 }
 0x609   : > { %3180 = vmatpush3.bf16.msra.mxu0 %v3357_v62  ;;  %v3377_v62 = vld [vmem:[#allocation11 + $0x60] ss:$16 sps:$4 sm:$0xff]  }
 0x60a   : > { %3181 = vmatprep.subr.bf16.mxu0 %v3775_v5 }
 0x60d   : > { %3182 = vmatpush3.bf16.msra.mxu0 %v3358_v10  ;;  %v3392_v10 = vld [vmem:[#allocation11 + $0xa8] ss:$16 sps:$4 sm:$0xff]  }
 0x69b   : > { %v1625_v38 = vpop.f32.mrb[4].mxu0  ;;  %v1671_v39 = vpop.f32.mrb[20].mxu1 }
 0x69c   : > { %v3147_v40 = vpop.f32.mrb[5].mxu0  ;;  %v3153_v41 = vpop.f32.mrb[21].mxu1 }
 0x69d   : > { %v1628_v42 = vpop.f32.mrb[6].mxu0  ;;  %v1674_v43 = vpop.f32.mrb[22].mxu1 }
 0x69e   : > { %v3148_v44 = vpop.f32.mrb[7].mxu0  ;;  %v3154_v55 = vpop.f32.mrb[23].mxu1  ;;  %v3461_v42 = vld [vmem:[%s530_s13] sm:$0xff]  ;;  %s4505_s13 = sld [smem:[#allocation27_spill]] }
 0x69f   : > { %v3359_v55 = vld [vmem:[#allocation11] ss:$16 sps:$4 sm:$0xff]  }
 0x6bb   : > { %v1763_v45 = vpop.f32.mrb[24].mxu1 }
 0x6bc   : > { %v1785_v46 = vcombine.low %v1671_v39, %v1763_v45  ;;  %v1786_v47 = vcombine.high %v1671_v39, %v1763_v45  ;;  %v3165_v48 = vpop.f32.mrb[25].mxu1  ;;  %v3361_v45 = vld [vmem:[#allocation11 + $0x4] ss:$16 sps:$4 sm:$0xff]  }
 0x6bd   : > { %v1766_v49 = vpop.f32.mrb[26].mxu1  ;;  %2277 = vmatprep.subr.bf16.mxu1 %v3361_v45  ;;  %v3370_v48 = vld [vmem:[#allocation11 + $0x2c] ss:$16 sps:$4 sm:$0xff]   ;;  %v3424_v45 = vld [vmem:[#allocation13 + $0xe0] sm:$0xff]  }
 0x6be   : > { %v3166_v50 = vpop.f32.mrb[27].mxu1  ;;  %v1793_v57 = vrot.slane %v1785_v46, %v4211_v8  ;;  %v1800_v58 = vrot.slane %v1786_v47, %v4211_v8  ;;  %v3362_v46 = vld [vmem:[#allocation11 + $0x8] ss:$16 sps:$4 sm:$0xff]   ;;  %v3364_v47 = vld [vmem:[#allocation11 + $0xc] ss:$16 sps:$4 sm:$0xff]   ;;  %2278 = vmatpush1.bf16.msra.mxu1 %v3359_v55  ;;  %v3423_v55 = vld [vmem:[#allocation13 + $0x60] sm:$0xff]  }
 0x6bf   : > { %2318 = vmatprep.subr.bf16.mxu0 %v3364_v47  ;;  %v3365_v49 = vld [vmem:[#allocation11 + $0x20] ss:$16 sps:$4 sm:$0xff]   ;;  %v3368_v50 = vld [vmem:[#allocation11 + $0x28] ss:$16 sps:$4 sm:$0xff]  }
 0x6c0   : > { %v3426_v47 = vld [vmem:[#allocation13 + $0xa0] sm:$0xff]  }
 0x6c3   : > { %v1717_v51 = vpop.f32.mrb[8].mxu0 }
 0x6c4   : > { %v1769_v52 = vcombine.low %v1625_v38, %v1717_v51  ;;  %v1770_v53 = vcombine.high %v1625_v38, %v1717_v51  ;;  %v3159_v54 = vpop.f32.mrb[9].mxu0  ;;  %v3373_v51 = vld [vmem:[#allocation11 + $0x44] ss:$16 sps:$4 sm:$0xff]  }
 0x6c5   : > { %v1720_v56 = vpop.f32.mrb[10].mxu0  ;;  %v3374_v54 = vld [vmem:[#allocation11 + $0x48] ss:$16 sps:$4 sm:$0xff]  }
 0x6c6   : > { %v1777_v59 = vrot.slane %v1769_v52, %v4211_v8  ;;  %v1784_v60 = vrot.slane %v1770_v53, %v4211_v8  ;;  %v3160_v61 = vpop.f32.mrb[11].mxu0  ;;  %v3376_v52 = vld [vmem:[#allocation11 + $0x4c] ss:$16 sps:$4 sm:$0xff]   ;;  %v3371_v53 = vld [vmem:[#allocation11 + $0x40] ss:$16 sps:$4 sm:$0xff]  }
 0x6c7   : > { %v3382_v61 = vld [vmem:[#allocation11 + $0x6c] ss:$16 sps:$4 sm:$0xff]  }
 0x6c8   : > { %v1801_v63 = vcombine.low %v1777_v59, %v1793_v57  ;;  %v1802_v0 = vcombine.high %v1777_v59, %v1793_v57  ;;  %v1817_v1 = vcombine.low %v1784_v60, %v1800_v58  ;;  %v1818_v2 = vcombine.high %v1784_v60, %v1800_v58  ;;  %v3379_v60 = vld [vmem:[#allocation11 + $0x64] ss:$16 sps:$4 sm:$0xff]  }
 0x6ca   : > { %v1809_v3 = vrot.slane %v1801_v63, %v4214_v15  ;;  %v1816_v6 = vrot.slane %v1802_v0, %v4214_v15  ;;  %v1825_v7 = vrot.slane %v1817_v1, %v4214_v15  ;;  %v1832_v9 = vrot.slane %v1818_v2, %v4214_v15  ;;  %v3380_v63 = vld [vmem:[#allocation11 + $0x68] ss:$16 sps:$4 sm:$0xff]   ;;  %v3385_v0 = vld [vmem:[#allocation11 + $0x84] ss:$16 sps:$4 sm:$0xff]   ;;  %v3388_v1 = vld [vmem:[#allocation11 + $0x8c] ss:$16 sps:$4 sm:$0xff]  }
 0x6cb   : > { %v3383_v2 = vld [vmem:[#allocation11 + $0x80] ss:$16 sps:$4 sm:$0xff]  }
 0x6cc   : > { %v1837_v11 = vcombine.low %v1809_v3, %v1816_v6  ;;  %v2939_v13 = vcombine.high %v1809_v3, %v1816_v6  ;;  %v1853_v16 = vcombine.low %v1825_v7, %v1832_v9  ;;  %v2940_v17 = vcombine.high %v1825_v7, %v1832_v9  ;;  %v3386_v3 = vld [vmem:[#allocation11 + $0x88] ss:$16 sps:$4 sm:$0xff]   ;;  %v3391_v6 = vld [vmem:[#allocation11 + $0xa4] ss:$16 sps:$4 sm:$0xff]   ;;  %v3394_v7 = vld [vmem:[#allocation11 + $0xac] ss:$16 sps:$4 sm:$0xff]  }
 0x6cd   : > { %v3389_v9 = vld [vmem:[#allocation11 + $0xa0] ss:$16 sps:$4 sm:$0xff]  }
 0x6ce   : > { %v1844_v18 = vrot.slane %v1837_v11, %v4211_v8  ;;  %v1852_v19 = vrot.slane %v2939_v13, %v4211_v8  ;;  %v1860_v20 = vrot.slane %v1853_v16, %v4211_v8  ;;  %v1868_v21 = vrot.slane %v2940_v17, %v4211_v8  ;;  %v3397_v11 = vld [vmem:[#allocation11 + $0xc4] ss:$16 sps:$4 sm:$0xff]   ;;  %v3400_v13 = vld [vmem:[#allocation11 + $0xcc] ss:$16 sps:$4 sm:$0xff]   ;;  %v3395_v16 = vld [vmem:[#allocation11 + $0xc0] ss:$16 sps:$4 sm:$0xff]  }
 0x6cf   : > { %v3398_v17 = vld [vmem:[#allocation11 + $0xc8] ss:$16 sps:$4 sm:$0xff]  }
 0x6d0   : > { %v1870_v22 = vcombine.high %v1844_v18, %v1852_v19  ;;  %v1886_v12 = vcombine.high %v1860_v20, %v1868_v21  ;;  %v1869_v14 = vcombine.low %v1844_v18, %v1852_v19  ;;  %v1885_v24 = vcombine.low %v1860_v20, %v1868_v21  ;;  %v3403_v18 = vld [vmem:[#allocation11 + $0xe4] ss:$16 sps:$4 sm:$0xff]   ;;  %v3401_v19 = vld [vmem:[#allocation11 + $0xe0] ss:$16 sps:$4 sm:$0xff]   ;;  %v3404_v20 = vld [vmem:[#allocation11 + $0xe8] ss:$16 sps:$4 sm:$0xff]  }
 0x6d1   : > { %v3406_v21 = vld [vmem:[#allocation11 + $0xec] ss:$16 sps:$4 sm:$0xff]  }
 0x6d2   : > { %v1884_v5 = vrot.slane %v1870_v22, %v4214_v15  ;;  %v1900_v26 = vrot.slane %v1886_v12, %v4214_v15  ;;  %v1877_v27 = vrot.slane %v1869_v14, %v4214_v15  ;;  %v1893_v28 = vrot.slane %v1885_v24, %v4214_v15  ;;  %v3407_v22 = vld [vmem:[#allocation13 + $0x40] sm:$0xff]  }
 0x6d3   : > { %v3408_v12 = vld [vmem:[#allocation13 + $0xc0] sm:$0xff]  }
 0x6d4   : > { %v1903_v30 = vcombine.low %v1884_v5, %v1900_v26  ;;  %v1902_v31 = vcombine.high %v1877_v27, %v1893_v28  ;;  %v1904_v32 = vcombine.high %v1884_v5, %v1900_v26  ;;  %v1901_v33 = vcombine.low %v1877_v27, %v1893_v28  ;;  %v2950_v27 = vld [vmem:[%s4505_s13] ss:$0 sm:$0xff] }
 0x6d6   : > { %1910 = vrot.lane.b32.xlu1 %v1903_v30, %s3779_s28  ;;  %1906 = vrot.lane.b32.xlu0 %v1902_v31, %s3780_s12  ;;  %v2951_v30 = vld [vmem:[%s4506_s26] ss:$0 sm:$0xff]  ;;  %s4509_s28 = sld [smem:[#allocation32_spill]]  ;;  %s3018_s12 = sshll.u32 %s4508_s3, 7 }
 0x6d7   : > { %s4393_s13 = scalar_lea.hbm %s4510_s22, %s3018_s12  ;;  %s3666_s26 = sshll.u32 %s3783_s6, 4  ;;  %s3667_s26 = int_to_ptr.vmem [resolvable:$false] %s3666_s26 }
 0x6d8   : > { %s3668_s19 = scalar_lea.vmem %s3667_s26, 256  ;;  %p3669_p2 = scmp.lt.s32.totalorder %s4395_s14, %s3667_s26 }
 0x6d9   : > { %p3670_p4 = scmp.lt.s32.totalorder %s3668_s19, %s3662_s25 }
 0x6da   : > { %1914 = vrot.lane.b32.xlu1 %v1904_v32, %s3778_s11 }
 0x6db   : > { %p3671_p11 = por %p3670_p4, %p3669_p2 }
 0x6dd   : > { %p3672_p6 = pnand %p3671_p11, %p3665_p5 }
 0x748   : > { %v1911_v8 = vpop.permute.xlu1 %1910  ;;  %v1907_v34 = vpop.permute.xlu0 %1906 }
 0x749   : > { %v1917_v35 = vsel %vm1346_vm1, %v1901_v33, %v1907_v34  ;;  %v3409_v33 = vld [vmem:[#allocation13] sm:$0xff]  }
 0x74a   : > { %v1919_v36 = vsel %vm1918_vm4, %v1917_v35, %v1911_v8  ;;  %v3410_v8 = vld [vmem:[#allocation13 + $0x80] sm:$0xff]   ;;  %v3411_v35 = vld [vmem:[#allocation13 + $0x48] sm:$0xff]  }
 0x74c   : > { %v1915_v23 = vpop.permute.xlu1 %1914 }
 0x74d   : > { %v1921_v15 = vsel %vm1920_vm5, %v1919_v36, %v1915_v23  ;;  %v3412_v23 = vld [vmem:[#allocation13 + $0xc8] sm:$0xff]  }
 0x74e   : > { %v1922_v25 = vpack.c.bf16 %v1921_v15, %v1921_v15  ;;  %v3413_v36 = vld [vmem:[#allocation13 + $0x8] sm:$0xff]  }
 0x74f   : > { %v3414_v15 = vld [vmem:[#allocation13 + $0x88] sm:$0xff]  }
 0x750   : > { %3184 = vmatmul.mubr.bf16.vlgmr.msra.gmra.mrb[12].mxu0 %v1922_v25  ;;  %v3415_v25 = vld [vmem:[#allocation13 + $0x50] sm:$0xff]  }
 0x751   : > { %2350 = vmatprep.mubr.bf16.mxu0 %v3776_v29  ;;  %v3367_v29 = vld [vmem:[#allocation11 + $0x24] ss:$16 sps:$4 sm:$0xff]   ;;  %2319 = vmatpush1.bf16.msra.mxu0 %v3362_v46 }
 0x752   : > { %2279 = vmatprep.subr.bf16.mxu1 %v3367_v29  ;;  %2320 = vmatprep.subr.bf16.mxu0 %v3370_v48  ;;  %v3425_v46 = vld [vmem:[#allocation13 + $0x20] sm:$0xff]   ;;  %v3427_v29 = vld [vmem:[#allocation13 + $0x68] sm:$0xff]  }
 0x753   : > { %2280 = vmatpush1.bf16.msra.mxu1 %v3365_v49  ;;  %v3428_v48 = vld [vmem:[#allocation13 + $0xe8] sm:$0xff]  }
 0x754   : > { %2281 = vmatprep.subr.bf16.mxu1 %v3373_v51  ;;  %v3429_v49 = vld [vmem:[#allocation13 + $0x28] sm:$0xff]   ;;  %v3431_v51 = vld [vmem:[#allocation13 + $0x70] sm:$0xff]  }
 0x755   : > { %2321 = vmatpush1.bf16.msra.mxu0 %v3368_v50  ;;  %v3430_v50 = vld [vmem:[#allocation13 + $0xa8] sm:$0xff]  }
 0x756   : > { %2322 = vmatprep.subr.bf16.mxu0 %v3376_v52  ;;  %v3432_v52 = vld [vmem:[#allocation13 + $0xf0] sm:$0xff]  }
 0x757   : > { %2282 = vmatpush1.bf16.msra.mxu1 %v3371_v53  ;;  %v3433_v53 = vld [vmem:[#allocation13 + $0x30] sm:$0xff]  }
 0x758   : > { %2283 = vmatprep.subr.bf16.mxu1 %v3379_v60  ;;  %v2099_v60 = vsub.s32 0, %v4208_v4 }
 0x759   : > { %2323 = vmatpush1.bf16.msra.mxu0 %v3374_v54  ;;  %v3434_v54 = vld [vmem:[#allocation13 + $0xb0] sm:$0xff]  }
 0x75a   : > { %2324 = vmatprep.subr.bf16.mxu0 %v3382_v61  ;;  %v2107_v61 = vsub.s32 2, %v4208_v4 }
 0x75b   : > { %2284 = vmatpush1.bf16.msra.mxu1 %v3377_v62  ;;  %v2095_v62 = vld [vmem:[%s4507_s10] sm:$0xf] }
 0x75c   : > { %2285 = vmatprep.subr.bf16.mxu1 %v3385_v0  ;;  %v2111_v0 = vsub.s32 3, %v4208_v4 }
 0x75d   : > { %2325 = vmatpush1.bf16.msra.mxu0 %v3380_v63  ;;  %v2103_v63 = vsub.s32 1, %v4208_v4 }
 0x75e   : > { %2326 = vmatprep.subr.bf16.mxu0 %v3388_v1  ;;  %v2100_v1 = vrot.slane %v2095_v62, %v2099_v60 }
 0x75f   : > { %2286 = vmatpush1.bf16.msra.mxu1 %v3383_v2  ;;  %v2108_v2 = vrot.slane %v2095_v62, %v2107_v61 }
 0x760   : > { %2287 = vmatprep.subr.bf16.mxu1 %v3391_v6  ;;  %v2112_v6 = vrot.slane %v2095_v62, %v2111_v0 }
 0x761   : > { %2327 = vmatpush1.bf16.msra.mxu0 %v3386_v3  ;;  %v2104_v3 = vrot.slane %v2095_v62, %v2103_v63 }
 0x762   : > { %2328 = vmatprep.subr.bf16.mxu0 %v3394_v7 }
 0x763   : > { %2288 = vmatpush1.bf16.msra.mxu1 %v3389_v9 }
 0x764   : > { %2289 = vmatprep.subr.bf16.mxu1 %v3397_v11 }
 0x765   : > { %2329 = vmatpush1.bf16.msra.mxu0 %v3392_v10 }
 0x766   : > { %2330 = vmatprep.subr.bf16.mxu0 %v3400_v13 }
 0x767   : > { %2290 = vmatpush1.bf16.msra.mxu1 %v3395_v16 }
 0x768   : > { %2291 = vmatprep.subr.bf16.mxu1 %v3403_v18 }
 0x769   : > { %2331 = vmatpush1.bf16.msra.mxu0 %v3398_v17 }
 0x76a   : > { %2332 = vmatprep.subr.bf16.mxu0 %v3406_v21 }
 0x76b   : > { %2292 = vmatpush1.bf16.msra.mxu1 %v3401_v19 }
 0x76c   : > { %3055 = vmatprep.subr.bf16.mxu1 %v3407_v22 }
 0x76d   : > { %2333 = vmatpush1.bf16.msra.mxu0 %v3404_v20 }
 0x76e   : > { %3077 = vmatprep.subr.bf16.mxu0 %v3408_v12 }
 0x823   : > { %v2028_v38 = vpop.f32.mrb[12].mxu0 }
 0x824   : > { %v2029_v39 = vadd.f32 %v2941_v37, %v2028_v38  ;;  %v3185_v40 = vpop.f32.mrb[13].mxu0  ;;  %v3416_v37 = vld [vmem:[#allocation13 + $0xd0] sm:$0xff]  }
 0x825   : > { %v2031_v41 = vpop.f32.mrb[14].mxu0  ;;  %v3417_v38 = vld [vmem:[#allocation13 + $0x10] sm:$0xff]   ;;  %v3419_v40 = vld [vmem:[#allocation13 + $0x58] sm:$0xff]  }
 0x826   : > { %v4367_v43 = vadd.f32 %v3461_v42, %v2029_v39  ;;  %v3186_v44 = vpop.f32.mrb[15].mxu0  ;;  %v3418_v39 = vld [vmem:[#allocation13 + $0x90] sm:$0xff]   ;;  %v3420_v41 = vld [vmem:[#allocation13 + $0xd8] sm:$0xff]  }
 0x827   : > { %v3421_v42 = vld [vmem:[#allocation13 + $0x18] sm:$0xff]  }
 0x828   : > { %2037 = vadd.xlane.f32.xlu0 %v4367_v43  ;;  %v3422_v44 = vld [vmem:[#allocation13 + $0x98] sm:$0xff]  }
 0x8b5   : > { %v2038_v56 = vpop.xlane.xlu0 %2037 }
 0x8b6   : > { %v2039_v57 = vmul.f32 0.0078125, %v2038_v56  ;;  %v3435_v56 = vld [vmem:[#allocation13 + $0x78] sm:$0xff]  }
 0x8b8   : > { %v2040_v58 = vsub.f32 %v4367_v43, %v2039_v57  ;;  %v3436_v57 = vld [vmem:[#allocation13 + $0xf8] sm:$0xff]  }
 0x8ba   : > { %v2041_v59 = vmul.f32 %v2040_v58, %v2040_v58 }
 0x8bc   : > { %2042 = vadd.xlane.f32.xlu1 %v2041_v59  ;;  %v3438_v59 = vld [vmem:[#allocation13 + $0xb8] sm:$0xff]  }
 0x949   : > { %v2043_v14 = vpop.xlane.xlu1 %2042 }
 0x94a   : > { %v2044_v24 = vmul.f32 0.0078125, %v2043_v14 }
 0x94c   : > { %v2045_v5 = vadd.f32 1e-05, %v2044_v24 }
 0x94e   : > { %3459 = vrsqrt.f32 %v2045_v5 }
 0x958   : > { %v3460_v26 = vpop.eup %3459 }
 0x959   : > { %v2047_v28 = vmul.f32 %v3460_v26, %v2040_v58  ;;  %v3437_v58 = vld [vmem:[#allocation13 + $0x38] sm:$0xff]  }
 0x95b   : > { %v2054_v31 = vmul.f32 %v2950_v27, %v2047_v28 }
 0x95d   : > { %v2061_v32 = vadd.f32 %v2951_v30, %v2054_v31 }
 0x95f   : > { %v2062_v34 = vpack.c.bf16 %v2061_v32, %v2061_v32  ;;  %v2984_v32 = vld [vmem:[%s4509_s28] ss:$0 sm:$0xff] }
 0x961   : > { %2310 = vmatmul.mubr.bf16.vlgmr.msra.gmra.mrb[28].mxu1 %v2062_v34  ;;  %2351 = vmatmul.mubr.bf16.vlgmr.msra.gmra.mrb[16].mxu0 %v2062_v34 }
 0x962   : > { %3056 = vmatpush3.bf16.msra.mxu1 %v3409_v33  ;;  %3078 = vmatpush3.bf16.msra.mxu0 %v3410_v8 }
 0x963   : > { %3057 = vmatprep.subr.bf16.mxu1 %v3411_v35  ;;  %3079 = vmatprep.subr.bf16.mxu0 %v3412_v23 }
 0x966   : > { %3058 = vmatpush3.bf16.msra.mxu1 %v3413_v36  ;;  %3080 = vmatpush3.bf16.msra.mxu0 %v3414_v15 }
 0x967   : > { %3059 = vmatprep.subr.bf16.mxu1 %v3415_v25  ;;  %3081 = vmatprep.subr.bf16.mxu0 %v3416_v37 }
 0x96a   : > { %3060 = vmatpush3.bf16.msra.mxu1 %v3417_v38  ;;  %3082 = vmatpush3.bf16.msra.mxu0 %v3418_v39 }
 0x96b   : > { %3061 = vmatprep.subr.bf16.mxu1 %v3419_v40  ;;  %3083 = vmatprep.subr.bf16.mxu0 %v3420_v41 }
 0x96e   : > { %3062 = vmatpush3.bf16.msra.mxu1 %v3421_v42  ;;  %3084 = vmatpush3.bf16.msra.mxu0 %v3422_v44 }
 0x96f   : > { %3063 = vmatprep.subr.bf16.mxu1 %v3423_v55  ;;  %3085 = vmatprep.subr.bf16.mxu0 %v3424_v45 }
 0x972   : > { %3064 = vmatpush3.bf16.msra.mxu1 %v3425_v46  ;;  %3086 = vmatpush3.bf16.msra.mxu0 %v3426_v47 }
 0x973   : > { %3065 = vmatprep.subr.bf16.mxu1 %v3427_v29  ;;  %3087 = vmatprep.subr.bf16.mxu0 %v3428_v48 }
 0x976   : > { %3066 = vmatpush3.bf16.msra.mxu1 %v3429_v49  ;;  %3088 = vmatpush3.bf16.msra.mxu0 %v3430_v50 }
 0x977   : > { %3067 = vmatprep.subr.bf16.mxu1 %v3431_v51  ;;  %3089 = vmatprep.subr.bf16.mxu0 %v3432_v52 }
 0x97a   : > { %3068 = vmatpush3.bf16.msra.mxu1 %v3433_v53  ;;  %3090 = vmatpush3.bf16.msra.mxu0 %v3434_v54 }
 0x97b   : > { %3069 = vmatprep.subr.bf16.mxu1 %v3435_v56  ;;  %3091 = vmatprep.subr.bf16.mxu0 %v3436_v57 }
 0x97e   : > { %3070 = vmatpush3.bf16.msra.mxu1 %v3437_v58  ;;  %3092 = vmatpush3.bf16.msra.mxu0 %v3438_v59 }
 0xa34   : > { %v2311_v7 = vpop.f32.mrb[28].mxu1  ;;  %v2352_v9 = vpop.f32.mrb[16].mxu0 }
 0xa35   : > { %v2312_v10 = vadd.f32 %v2311_v7, %v2100_v1  ;;  %v2353_v11 = vadd.f32 %v2352_v9, %v2108_v2  ;;  %v2313_v13 = vpop.f32.mrb[29].mxu1  ;;  %v2354_v16 = vpop.f32.mrb[17].mxu0 }
 0xa36   : > { %v2314_v17 = vadd.f32 %v2313_v13, %v2104_v3  ;;  %v2355_v18 = vadd.f32 %v2354_v16, %v2112_v6  ;;  %v2315_v19 = vpop.f32.mrb[30].mxu1  ;;  %v2356_v20 = vpop.f32.mrb[18].mxu0 }
 0xa37   : > { %v2359_v21 = vmax.f32 %v2312_v10, 0.0  ;;  %v2361_v22 = vmax.f32 %v2353_v11, 0.0  ;;  %v2316_v12 = vpop.f32.mrb[31].mxu1  ;;  %v2357_v14 = vpop.f32.mrb[19].mxu0 }
 0xa38   : > { %v2360_v24 = vmax.f32 %v2314_v17, 0.0  ;;  %v2362_v4 = vmax.f32 %v2355_v18, 0.0 }
 0xa39   : > { %v2363_v27 = vpack.c.bf16 %v2359_v21, %v2359_v21  ;;  %v2365_v28 = vpack.c.bf16 %v2361_v22, %v2361_v22 }
 0xa3a   : > { %v2364_v5 = vpack.c.bf16 %v2360_v24, %v2360_v24  ;;  %v2366_v26 = vpack.c.bf16 %v2362_v4, %v2362_v4 }
 0xa3c   : > { %2662 = vmatprep.mubr.bf16.mxu1 %v2364_v5  ;;  %2702 = vmatprep.mubr.bf16.mxu0 %v2366_v26 }
 0xa3d   : > { %2663 = vmatmul.mubr.bf16.vlgmr.msra.gmra.mrb[32].mxu1 %v2363_v27  ;;  %2703 = vmatmul.mubr.bf16.vlgmr.msra.gmra.mrb[20].mxu0 %v2365_v28 }
 0xb10   : > { %v3071_v30 = vpop.f32.mrb[32].mxu1  ;;  %v3093_v31 = vpop.f32.mrb[20].mxu0 }
 0xb11   : > { %v3072_v33 = vpop.f32.mrb[33].mxu1  ;;  %v3094_v8 = vpop.f32.mrb[21].mxu0 }
 0xb12   : > { %v3073_v34 = vadd.f32 %v3072_v33, %v3071_v30  ;;  %v3095_v35 = vadd.f32 %v3094_v8, %v3093_v31  ;;  %v3074_v23 = vpop.f32.mrb[34].mxu1  ;;  %v3096_v36 = vpop.f32.mrb[22].mxu0 }
 0xb13   : > { %v3075_v15 = vpop.f32.mrb[35].mxu1  ;;  %v3097_v25 = vpop.f32.mrb[23].mxu0 }
 0xb14   : > { %v2665_v37 = vadd.f32 %v3073_v34, %v2984_v32 }
 0xb16   : > { %v2705_v38 = vadd.f32 %v3095_v35, %v2665_v37 }
 0xb18   : > { %v2710_v39 = vadd.f32 %v2705_v38, %v4367_v43 }
 0xb1a   : > { %2711 = vst [vmem:[%s608_s7] sm:$0xff] %v2710_v39 }
 0xb1b   : > { %3675 = shalt.err (!%p3672_p6)
}
 0xb1c   : > { %s3676_s24 = scalar_lea.hbm %s4393_s13, 128  ;;  %s3680_s3 = scalar_lea.hbm %s4510_s22, 256 }
 0xb1d   : > { %p3677_p10 = scmp.ne.s32.totalorder %s4393_s13, %s3676_s24  ;;  %p3681_p8 = scmp.lt.u32.totalorder %s4393_s13, %s4510_s22 }
 0xb1e   : > { %p3682_p3 = scmp.lt.u32.totalorder %s3680_s3, %s3676_s24  ;;  %p3684_p13 = scmp.lt.u32.totalorder %s3676_s24, %s4393_s13 }
 0xb1f   : > { %p3678_p1 = pnand %p3677_p10, %p4511_p0 }
 0xb20   : > { %p3683_p12 = por %p3682_p3, %p3681_p8 }
 0xb21   : > { %p3679_p9 = pneg %p3678_p1 }
 0xb22   : > { %p3685_p7 = por %p3684_p13, %p3683_p12 }
 0xb24   : > { %p3686_p5 = pnand %p3685_p7, %p3679_p9 }
 0xb26   : > { %3689 = shalt.err (!%p3686_p5)
}
 0xb27   : > { %3211 = dma.vmem_to_hbm [thread:$0]  (%p4511_p0), %s4395_s14, 128, %s4393_s13, %s2713_s20  }
 0xb28 PF: > { %s2739_s28 = sand.u32 1, %s3740_s29   ;;  %p4512_p2 = scmp.ne.s32.totalorder %s4493_s4, 0 }
 0xb29   : > { %p4513_p4 = scmp.ge.s32.totalorder %s3760_s18, 2  ;;  %s2740_s12 = scalar_lea.sflag [#allocation4], %s2739_s28 }
 0xb2b   : > { %p3237_p11 = pnand %p4513_p4, %p4512_p2 }
 0xb2d   : > { %3735 = dma.done.wait (!%p3237_p11), %s2740_s12, 128  }
 0xb2e   : > { %3737 = vsyncadd (!%p3237_p11), %s2740_s12, 4294967168  ;;  %s35_s18 = sadd.s32 1, %s3760_s18   ;;  %s4514_s29 = smov %s3744_s30 }
 0xb2f   : > { %p32_p6 = scmp.ge.s32.totalorder %s35_s18, 4   ;;  %s4515_s30 = smov %s3748_s15 }
 0xb30   : > { %s4516_s15 = smov %s4056_s5  ;;  %s4517_s16 = smov %s3756_s17 }
 0xb31   : > { %s4518_s17 = smov %s4520_s23  ;;  %34 = sbr.rel (!%p32_p6) target bundleno = 23 (0x17), region = 154 }
 0xb38   :  { %2745 = vsyncpa [#allocation3], 1 }
 0xb39   :  { %2747 = vsyncpa [#allocation3 + $0x1], 1 }
 0xb3a   :  { %2748 = vsyncpa [#allocation6], 1 }
 0xb3b   :  { %2750 = vsyncpa [#allocation6 + $0x1], 1 }
 0xb3c   :  { %2751 = vsyncpa [#allocation9], 1 }
 0xb3d   :  { %2752 = vsyncpa [#allocation12], 1 }
 0xb3e   :  { %2753 = vsyncpa [#allocation4], 1 }
 0xb3f   :  { %2755 = vsyncpa [#allocation4 + $0x1], 1 }

</bundles_post_ra>
